<compile_context>
chip_gen: v6e
topology: v6e:2x2x1
jax: 0.10.0
libtpu: 0.0.40
codegen_flags: <defaults>
</compile_context>

<pallas_src>
import functools

import jax
import jax.numpy as jnp
from jax.experimental import pallas as pl
from jax.experimental.pallas import tpu as pltpu

_LANE = 128
_NEG_INF = -1e30  # folded into the output-layer bias to mask padded class columns


def _round_up(n, m):
    return ((n + m - 1) // m) * m


def _make_fused_mlp_kernel(num_layers):
    """Fused MLP kernel body: (num_layers-1) sigmoid layers + softmax output.

    refs = (x_ref, w1, b1, ..., wL, bL, o_ref).  Weights are bf16 (MXU-native),
    biases f32 (output-layer bias carries the -1e30 padded-column mask).
    """

    def kernel(*refs):
        x_ref = refs[0]
        o_ref = refs[-1]
        wb = refs[1:-1]

        h = x_ref[...]                                   # (TILE_B, 784) f32

        # Hidden layers: sigmoid(h @ w + b), one bf16 MXU matmul each.
        for li in range(num_layers - 1):
            w = wb[2 * li][...]                          # bf16
            b = wb[2 * li + 1][...]                      # f32
            y = jnp.dot(h.astype(jnp.bfloat16), w,
                        preferred_element_type=jnp.float32) + b
            # sigmoid(y) == 0.5*tanh(0.5*y)+0.5: single EUP op, exact.
            h = 0.5 * jnp.tanh(0.5 * y) + 0.5            # f32

        # Output layer: padded-class mask already lives in the bias (-1e30),
        # so plain softmax with an exact divide.
        w = wb[-2][...]
        b = wb[-1][...]
        y = jnp.dot(h.astype(jnp.bfloat16), w,
                    preferred_element_type=jnp.float32) + b
        m = jnp.max(y, axis=1, keepdims=True)
        e = jnp.exp(y - m)
        o_ref[...] = e / jnp.sum(e, axis=1, keepdims=True)

    return kernel


def prepare_memristive_params(params, *, G_off, G_on, k_V):
    """Hoisted crossbar mapping, done once per parameter set (not per forward).

    Digital weights/biases map to differential conductance pairs (G_pos, G_neg)
    with k_G = (G_on - G_off)/max|w,b|.  Differential currents add linearly and
    k_V cancels in y = I/(k_V*k_G), so the kernel only needs the folded-back
    digital-domain tensors w_eff = (G_pos-G_neg)/k_G, b_eff = (G_pos_b-G_neg_b)/k_G.

    Layout: output dims zero-padded to multiples of 128 (lane-dense); input dim of
    layer L>0 padded to the previous layer's padded output dim (zero rows), layer 0
    keeps fan_in=784 so x needs no host-side pad.  Weights returned as bf16 (MXU
    operands), biases as f32; the final layer's padded bias columns are set to
    -1e30 so the kernel's softmax mask is free.
    """
    del k_V  # cancels exactly in the ideal (no-nonideality) crossbar
    prepared = []
    n_layers = len(params)
    for li, (w, b) in enumerate(params):
        w = w.astype(jnp.float32)
        b = b.astype(jnp.float32)
        max_weight = jnp.maximum(jnp.max(jnp.abs(w)), jnp.max(jnp.abs(b)))
        max_weight = jnp.maximum(max_weight, jnp.float32(1e-12))  # guard /0
        k_G = (G_on - G_off) / max_weight

        g_pos_w = G_off + jnp.maximum(k_G * w, 0.0)
        g_neg_w = G_off - jnp.minimum(k_G * w, 0.0)
        g_pos_b = G_off + jnp.maximum(k_G * b, 0.0)
        g_neg_b = G_off - jnp.minimum(k_G * b, 0.0)

        w_eff = (g_pos_w - g_neg_w) / k_G
        b_eff = (g_pos_b - g_neg_b) / k_G

        fan_in, fan_out = w.shape
        in_dim = fan_in if li == 0 else _round_up(fan_in, _LANE)
        out_dim = _round_up(fan_out, _LANE)

        w_p = jnp.zeros((in_dim, out_dim), jnp.float32)
        w_p = w_p.at[:fan_in, :fan_out].set(w_eff)
        b_p = jnp.zeros((1, out_dim), jnp.float32)
        b_p = b_p.at[:, :fan_out].set(b_eff)
        if li == n_layers - 1:
            # Fold the padded-class softmax mask into the output bias.
            b_p = b_p.at[:, fan_out:].set(jnp.float32(_NEG_INF))
        prepared.append((w_p.astype(jnp.bfloat16), b_p))
    return prepared


def memristive_mlp_forward(x, prepared_params, *, num_classes=10, tile_b=256):
    """x.view(-1, 784) -> fused [sigmoid]* -> softmax, one batch-tiled pallas_call."""
    B = x.shape[0]
    h = x.reshape(B, -1).astype(jnp.float32)           # (B, 784), no host padding
    in_features = h.shape[1]
    out_pad = prepared_params[-1][1].shape[1]
    num_layers = len(prepared_params)

    tile_b = max(8, min(int(tile_b), _round_up(B, 8)))
    grid = (pl.cdiv(B, tile_b),)

    flat = []
    in_specs = [pl.BlockSpec((tile_b, in_features), lambda i: (i, 0))]
    for w, b in prepared_params:
        flat.extend((w, b))
        # Constant index maps: weights/biases DMA'd once, VMEM-resident across steps.
        in_specs.append(pl.BlockSpec(w.shape, lambda i: (0, 0)))
        in_specs.append(pl.BlockSpec(b.shape, lambda i: (0, 0)))
    out_specs = pl.BlockSpec((tile_b, out_pad), lambda i: (i, 0))

    kernel = _make_fused_mlp_kernel(num_layers)
    out = pl.pallas_call(
        kernel,
        out_shape=jax.ShapeDtypeStruct((B, out_pad), jnp.float32),
        grid=grid,
        in_specs=in_specs,
        out_specs=out_specs,
        compiler_params=pltpu.CompilerParams(
            dimension_semantics=("parallel",),   # batch tiles shard across TCs on v7x
        ),
    )(h, *flat)
    return out[:, :num_classes]


def init_memristive_mlp_params(key, number_hidden_layers=2,
                               hidden_layer_sizes=None):
    """Deterministic parameter init mirroring the module's layer shapes."""
    default_neurons = {1: [112], 2: [100, 100], 3: [90, 95, 95],
                       4: [85, 85, 85, 85]}
    if hidden_layer_sizes is None:
        hidden_layer_sizes = default_neurons[number_hidden_layers]
    sizes = [784] + list(hidden_layer_sizes) + [10]
    params = []
    for fan_in, fan_out in zip(sizes[:-1], sizes[1:]):
        key, kw, kb = jax.random.split(key, 3)
        bound = 1.0 / jnp.sqrt(jnp.float32(fan_in))
        w = jax.random.uniform(kw, (fan_in, fan_out), jnp.float32,
                               minval=-bound, maxval=bound)
        b = jax.random.uniform(kb, (1, fan_out), jnp.float32,
                               minval=-bound, maxval=bound)
        params.append((w, b))
    return params


def _reference_forward(x, params):
    """Pure-JAX f32 reference: ideal MemristiveMLP == plain MLP."""
    B = x.shape[0]
    h = x.reshape(B, 784).astype(jnp.float32)
    for w, b in params[:-1]:
        h = jax.nn.sigmoid(h @ w + b)
    w, b = params[-1]
    return jax.nn.softmax(h @ w + b, axis=1)


if __name__ == "__main__":
    key = jax.random.PRNGKey(0)
    k_x, k_p = jax.random.split(key)

    # MNIST-like input, NCHW: (batch=256, channels=1, 28, 28) -> flattened to 784.
    # tile_b=128 gives a 2-step "parallel" batch grid (exercises pipelining/megacore).
    x = jax.random.normal(k_x, (256, 1, 28, 28), dtype=jnp.float32)

    # Crossbar / device constants (G_off, G_on in siemens; k_V in volts).
    G_off, G_on, k_V = 1e-4, 1e-3, 0.5

    params = init_memristive_mlp_params(k_p, number_hidden_layers=2)
    prepared = prepare_memristive_params(params, G_off=G_off, G_on=G_on, k_V=k_V)

    fwd = jax.jit(functools.partial(memristive_mlp_forward,
                                    num_classes=10, tile_b=128))
    out = jax.block_until_ready(fwd(x, prepared))

    assert out.shape == (256, 10)
    assert bool(jnp.all(jnp.isfinite(out)))
    # exact softmax normalization -> rows sum to 1 at f32 precision
    assert bool(jnp.allclose(jnp.sum(out, axis=1), 1.0, atol=1e-5))
    # matches the ideal (no-nonideality) module forward (bf16 weights => loose-ish tol)
    ref = _reference_forward(x, params)
    assert bool(jnp.allclose(out, ref, atol=1e-2))

    print("KERNEL_OK")
</pallas_src>

<mosaic_0001>
module attributes {stable_mosaic.version = 11 : i64} {
  func.func @kernel(%arg0: i32, %arg1: memref<128x784xf32, #tpu.memory_space<vmem>>, %arg2: memref<784x128xbf16, #tpu.memory_space<vmem>>, %arg3: memref<1x128xf32, #tpu.memory_space<vmem>>, %arg4: memref<128x128xbf16, #tpu.memory_space<vmem>>, %arg5: memref<1x128xf32, #tpu.memory_space<vmem>>, %arg6: memref<128x128xbf16, #tpu.memory_space<vmem>>, %arg7: memref<1x128xf32, #tpu.memory_space<vmem>>, %arg8: memref<128x128xf32, #tpu.memory_space<vmem>>) attributes {dimension_semantics = [#tpu.dimension_semantics<parallel>], iteration_bounds = array<i64: 2>, scalar_prefetch = 0 : i64, scratch_operands = 0 : i64, tpu.core_type = #tpu.core_type<tc>, window_params = [{transform_indices = @transform_0, window_bounds = array<i64: 128, 784>}, {pipeline_mode = #tpu.pipeline_mode<synchronous>, transform_indices = @transform_1, window_bounds = array<i64: 784, 128>}, {pipeline_mode = #tpu.pipeline_mode<synchronous>, transform_indices = @transform_2, window_bounds = array<i64: 1, 128>}, {pipeline_mode = #tpu.pipeline_mode<synchronous>, transform_indices = @transform_3, window_bounds = array<i64: 128, 128>}, {pipeline_mode = #tpu.pipeline_mode<synchronous>, transform_indices = @transform_4, window_bounds = array<i64: 1, 128>}, {pipeline_mode = #tpu.pipeline_mode<synchronous>, transform_indices = @transform_5, window_bounds = array<i64: 128, 128>}, {pipeline_mode = #tpu.pipeline_mode<synchronous>, transform_indices = @transform_6, window_bounds = array<i64: 1, 128>}, {transform_indices = @transform_7, window_bounds = array<i64: 128, 128>}]} {
    %c0 = arith.constant 0 : index
    %c0_0 = arith.constant 0 : index
    %0 = vector.load %arg1[%c0, %c0_0] : memref<128x784xf32, #tpu.memory_space<vmem>>, vector<128x784xf32>
    %c0_1 = arith.constant 0 : index
    %c0_2 = arith.constant 0 : index
    %1 = vector.load %arg2[%c0_1, %c0_2] : memref<784x128xbf16, #tpu.memory_space<vmem>>, vector<784x128xbf16>
    %c0_3 = arith.constant 0 : index
    %c0_4 = arith.constant 0 : index
    %2 = vector.load %arg3[%c0_3, %c0_4] : memref<1x128xf32, #tpu.memory_space<vmem>>, vector<1x128xf32>
    %3 = arith.truncf %0 : vector<128x784xf32> to vector<128x784xbf16>
    %cst = arith.constant dense<0.000000e+00> : vector<128x128xf32>
    %4 = tpu.matmul %3, %1, %cst {dimension_numbers = #tpu.dot_dimension_numbers<[1], [0], [0], [1], [0, 0, 1, 1], [], []>} : vector<128x784xbf16>, vector<784x128xbf16>, vector<128x128xf32> -> vector<128x128xf32>
    %5 = vector.broadcast %2 : vector<1x128xf32> to vector<128x128xf32>
    %6 = arith.addf %4, %5 : vector<128x128xf32>
    %cst_5 = arith.constant 5.000000e-01 : f32
    %7 = vector.broadcast %cst_5 : f32 to vector<128x128xf32>
    %8 = arith.mulf %7, %6 : vector<128x128xf32>
    %9 = math.tanh %8 : vector<128x128xf32>
    %cst_6 = arith.constant 5.000000e-01 : f32
    %10 = vector.broadcast %cst_6 : f32 to vector<128x128xf32>
    %11 = arith.mulf %10, %9 : vector<128x128xf32>
    %cst_7 = arith.constant 5.000000e-01 : f32
    %12 = vector.broadcast %cst_7 : f32 to vector<128x128xf32>
    %13 = arith.addf %11, %12 : vector<128x128xf32>
    %c0_8 = arith.constant 0 : index
    %c0_9 = arith.constant 0 : index
    %14 = vector.load %arg4[%c0_8, %c0_9] : memref<128x128xbf16, #tpu.memory_space<vmem>>, vector<128x128xbf16>
    %c0_10 = arith.constant 0 : index
    %c0_11 = arith.constant 0 : index
    %15 = vector.load %arg5[%c0_10, %c0_11] : memref<1x128xf32, #tpu.memory_space<vmem>>, vector<1x128xf32>
    %16 = arith.truncf %13 : vector<128x128xf32> to vector<128x128xbf16>
    %cst_12 = arith.constant dense<0.000000e+00> : vector<128x128xf32>
    %17 = tpu.matmul %16, %14, %cst_12 {dimension_numbers = #tpu.dot_dimension_numbers<[1], [0], [0], [1], [0, 0, 1, 1], [], []>} : vector<128x128xbf16>, vector<128x128xbf16>, vector<128x128xf32> -> vector<128x128xf32>
    %18 = vector.broadcast %15 : vector<1x128xf32> to vector<128x128xf32>
    %19 = arith.addf %17, %18 : vector<128x128xf32>
    %cst_13 = arith.constant 5.000000e-01 : f32
    %20 = vector.broadcast %cst_13 : f32 to vector<128x128xf32>
    %21 = arith.mulf %20, %19 : vector<128x128xf32>
    %22 = math.tanh %21 : vector<128x128xf32>
    %cst_14 = arith.constant 5.000000e-01 : f32
    %23 = vector.broadcast %cst_14 : f32 to vector<128x128xf32>
    %24 = arith.mulf %23, %22 : vector<128x128xf32>
    %cst_15 = arith.constant 5.000000e-01 : f32
    %25 = vector.broadcast %cst_15 : f32 to vector<128x128xf32>
    %26 = arith.addf %24, %25 : vector<128x128xf32>
    %c0_16 = arith.constant 0 : index
    %c0_17 = arith.constant 0 : index
    %27 = vector.load %arg6[%c0_16, %c0_17] : memref<128x128xbf16, #tpu.memory_space<vmem>>, vector<128x128xbf16>
    %c0_18 = arith.constant 0 : index
    %c0_19 = arith.constant 0 : index
    %28 = vector.load %arg7[%c0_18, %c0_19] : memref<1x128xf32, #tpu.memory_space<vmem>>, vector<1x128xf32>
    %29 = arith.truncf %26 : vector<128x128xf32> to vector<128x128xbf16>
    %cst_20 = arith.constant dense<0.000000e+00> : vector<128x128xf32>
    %30 = tpu.matmul %29, %27, %cst_20 {dimension_numbers = #tpu.dot_dimension_numbers<[1], [0], [0], [1], [0, 0, 1, 1], [], []>} : vector<128x128xbf16>, vector<128x128xbf16>, vector<128x128xf32> -> vector<128x128xf32>
    %31 = vector.broadcast %28 : vector<1x128xf32> to vector<128x128xf32>
    %32 = arith.addf %30, %31 : vector<128x128xf32>
    %cst_21 = arith.constant dense<0xFF800000> : vector<128xf32>
    %33 = vector.multi_reduction <maximumf>, %32, %cst_21 [1] : vector<128x128xf32> to vector<128xf32>
    %34 = vector.shape_cast %33 : vector<128xf32> to vector<128x1xf32>
    %35 = vector.broadcast %34 : vector<128x1xf32> to vector<128x128xf32>
    %36 = arith.subf %32, %35 : vector<128x128xf32>
    %37 = math.exp %36 : vector<128x128xf32>
    %cst_22 = arith.constant dense<0.000000e+00> : vector<128xf32>
    %38 = vector.multi_reduction <add>, %37, %cst_22 [1] : vector<128x128xf32> to vector<128xf32>
    %39 = vector.shape_cast %38 : vector<128xf32> to vector<128x1xf32>
    %40 = vector.broadcast %39 : vector<128x1xf32> to vector<128x128xf32>
    %41 = arith.divf %37, %40 : vector<128x128xf32>
    %c0_23 = arith.constant 0 : index
    %c0_24 = arith.constant 0 : index
    %42 = vector.load %arg8[%c0_23, %c0_24] : memref<128x128xf32, #tpu.memory_space<vmem>>, vector<128x128xf32>
    tpu.vector_store %arg8[%c0_23, %c0_24], %41 {strides = array<i32>} : memref<128x128xf32, #tpu.memory_space<vmem>>, vector<128x128xf32>,
    return
  }
  func.func @transform_0(%arg0: i32) -> (i32, i32) {
    %c0_i32 = arith.constant 0 : i32
    %c0_i32_0 = arith.constant 0 : i32
    return %arg0, %c0_i32 : i32, i32
  }
  func.func @transform_1(%arg0: i32) -> (i32, i32) {
    %c0_i32 = arith.constant 0 : i32
    %c0_i32_0 = arith.constant 0 : i32
    %c0_i32_1 = arith.constant 0 : i32
    return %c0_i32, %c0_i32_0 : i32, i32
  }
  func.func @transform_2(%arg0: i32) -> (i32, i32) {
    %c0_i32 = arith.constant 0 : i32
    %c0_i32_0 = arith.constant 0 : i32
    %c0_i32_1 = arith.constant 0 : i32
    return %c0_i32, %c0_i32_0 : i32, i32
  }
  func.func @transform_3(%arg0: i32) -> (i32, i32) {
    %c0_i32 = arith.constant 0 : i32
    %c0_i32_0 = arith.constant 0 : i32
    %c0_i32_1 = arith.constant 0 : i32
    return %c0_i32, %c0_i32_0 : i32, i32
  }
  func.func @transform_4(%arg0: i32) -> (i32, i32) {
    %c0_i32 = arith.constant 0 : i32
    %c0_i32_0 = arith.constant 0 : i32
    %c0_i32_1 = arith.constant 0 : i32
    return %c0_i32, %c0_i32_0 : i32, i32
  }
  func.func @transform_5(%arg0: i32) -> (i32, i32) {
    %c0_i32 = arith.constant 0 : i32
    %c0_i32_0 = arith.constant 0 : i32
    %c0_i32_1 = arith.constant 0 : i32
    return %c0_i32, %c0_i32_0 : i32, i32
  }
  func.func @transform_6(%arg0: i32) -> (i32, i32) {
    %c0_i32 = arith.constant 0 : i32
    %c0_i32_0 = arith.constant 0 : i32
    %c0_i32_1 = arith.constant 0 : i32
    return %c0_i32, %c0_i32_0 : i32, i32
  }
  func.func @transform_7(%arg0: i32) -> (i32, i32) {
    %c0_i32 = arith.constant 0 : i32
    %c0_i32_0 = arith.constant 0 : i32
    return %arg0, %c0_i32 : i32, i32
  }
}

</mosaic_0001>

<bundles_post_ra>
// kernel: memristive_mlp_forward.1
= control target key start
LH: loop header
LB: loop body
LE: loop exit
PB: predicated region body
PF: predicated region fallthrough
CT: control target
= control target key end

     0   :  { %s2630_s24 = smov 0   ;;  %s3273_s0 = inlined_call_operand.vmem [shape: f32[256,784], index: 0, kind: input, shape index: {}]   ;;  %s3274_s1 = inlined_call_operand.vmem [shape: bf16[784,128], index: 1, kind: input, shape index: {}]   ;;  %s3275_s2 = inlined_call_operand.vmem [shape: f32[1,128], index: 2, kind: input, shape index: {}]   ;;  %s3276_s3 = inlined_call_operand.vmem [shape: bf16[128,128], index: 3, kind: input, shape index: {}]   ;;  %s3277_s4 = inlined_call_operand.vmem [shape: f32[1,128], index: 4, kind: input, shape index: {}]   ;;  %s3278_s5 = inlined_call_operand.vmem [shape: bf16[128,128], index: 5, kind: input, shape index: {}]   ;;  %s3279_s6 = inlined_call_operand.vmem [shape: f32[1,128], index: 6, kind: input, shape index: {}]   ;;  %s3280_s7 = inlined_call_operand.vmem [shape: f32[256,128], index: 7, kind: output, shape index: {}]  }
   0x1 LB: > { %s1962_s25 = sadd.s32 4294967295, %s2588_s24   ;;  %p1966_p0 = scmp.ge.s32.totalorder %s2588_s24, 1  ;;  %s2588_s24 = sphi %s2630_s24, %s17_s24  }
   0x2   : > { %p239_p1 = scmp.lt.s32.totalorder %s2588_s24, 3 }
   0x4   : > { %p240_p2 = pnand %p1966_p0, %p239_p1 }
   0x6   : > { %243 = sbr.rel (%p240_p2) target bundleno = 1124 (0x464), region = 48 }
   0xb   : > { %v2389_v0 = vld [vmem:[%s3274_s1 + $0x78] sm:$0xff]   ;;  %v2393_v4 = vld [vmem:[%s3274_s1 + $0x70] sm:$0xff]   ;;  %v2397_v8 = vld [vmem:[%s3274_s1 + $0x68] sm:$0xff]   ;;  %s1967_s12 = sshll.u32 %s1962_s25, 4  ;;  %vm853_vm0 = vcmask 130048  }
   0xc   : > { %v2390_v1 = vld [vmem:[%s3274_s1 + $0xf8] sm:$0xff]   ;;  %2049 = vmatprep.subr.bf16.mxu0 %v2389_v0  ;;  %v2394_v5 = vld [vmem:[%s3274_s1 + $0xf0] sm:$0xff]   ;;  %v2398_v9 = vld [vmem:[%s3274_s1 + $0xe8] sm:$0xff]   ;;  %p273_p3 = scmp.lt.s32.totalorder %s1967_s12, 31 }
   0xd   : > { %v2391_v2 = vld [vmem:[%s3274_s1 + $0x38] sm:$0xff]   ;;  %2113 = vmatprep.subr.bf16.mxu1 %v2390_v1  ;;  %v2395_v6 = vld [vmem:[%s3274_s1 + $0x30] sm:$0xff]   ;;  %v2399_v10 = vld [vmem:[%s3274_s1 + $0x28] sm:$0xff]  }
   0xe   : > { %v2392_v3 = vld [vmem:[%s3274_s1 + $0xb8] sm:$0xff]   ;;  %2050 = vmatpush3.bf16.msra.mxu0 %v2391_v2  ;;  %v2396_v7 = vld [vmem:[%s3274_s1 + $0xb0] sm:$0xff]   ;;  %v2400_v11 = vld [vmem:[%s3274_s1 + $0xa8] sm:$0xff]   ;;  %s3288_s12 = smov (!%p273_p3, %s1967_s12), 31 }
   0xf   : > { %2114 = vmatpush3.bf16.msra.mxu1 %v2392_v3  ;;  %2051 = vmatprep.subr.bf16.mxu0 %v2393_v4  ;;  %v2401_v12 = vld [vmem:[%s3274_s1 + $0x60] sm:$0xff]   ;;  %v2405_v16 = vld [vmem:[%s3274_s1 + $0x58] sm:$0xff]   ;;  %v2409_v20 = vld [vmem:[%s3274_s1 + $0x50] sm:$0xff]   ;;  %s2380_s14 = smul.u32 56, %s3288_s12  ;;  %s1970_s19 = sshll.u32 %s3288_s12, 3 }
  0x10   : > { %2115 = vmatprep.subr.bf16.mxu1 %v2394_v5  ;;  %v2402_v13 = vld [vmem:[%s3274_s1 + $0xe0] sm:$0xff]   ;;  %v2406_v17 = vld [vmem:[%s3274_s1 + $0xd8] sm:$0xff]   ;;  %v2410_v21 = vld [vmem:[%s3274_s1 + $0xd0] sm:$0xff]   ;;  %s3236_s21 = scalar_lea.vmem %s3280_s7, %s1970_s19 }
  0x11   : > { %v2403_v14 = vld [vmem:[%s3274_s1 + $0x20] sm:$0xff]   ;;  %v2407_v18 = vld [vmem:[%s3274_s1 + $0x18] sm:$0xff]   ;;  %v2411_v22 = vld [vmem:[%s3274_s1 + $0x10] sm:$0xff]   ;;  %s2736_s26 = scalar_lea.vmem %s3273_s0, %s2380_s14 }
  0x12   : > { %2052 = vmatpush3.bf16.msra.mxu0 %v2395_v6  ;;  %v2404_v15 = vld [vmem:[%s3274_s1 + $0xa0] sm:$0xff]   ;;  %v2408_v19 = vld [vmem:[%s3274_s1 + $0x98] sm:$0xff]   ;;  %v2412_v23 = vld [vmem:[%s3274_s1 + $0x90] sm:$0xff]  }
  0x13   : > { %2116 = vmatpush3.bf16.msra.mxu1 %v2396_v7  ;;  %2053 = vmatprep.subr.bf16.mxu0 %v2397_v8  ;;  %v2413_v24 = vld [vmem:[%s3274_s1 + $0x48] sm:$0xff]   ;;  %v2417_v28 = vld [vmem:[%s3274_s1 + $0x40] sm:$0xff]   ;;  %v289_v34 = vld [vmem:[%s2736_s26 + $0x18] sm:$0xff] }
  0x14   : > { %2117 = vmatprep.subr.bf16.mxu1 %v2398_v9  ;;  %v2414_v25 = vld [vmem:[%s3274_s1 + $0xc8] sm:$0xff]   ;;  %v2418_v29 = vld [vmem:[%s3274_s1 + $0xc0] sm:$0xff]   ;;  %v296_v36 = vld [vmem:[%s2736_s26 + $0x50] sm:$0xff] }
  0x15   : > { %v2415_v26 = vld [vmem:[%s3274_s1 + $0x8] sm:$0xff]   ;;  %v2419_v30 = vld [vmem:[%s3274_s1] sm:$0xff]   ;;  %v293_v38 = vld [vmem:[%s2736_s26 + $0x38] sm:$0xff]  ;;  %v500_v39 = vpack.c.bf16 %v296_v36, %v289_v34 }
  0x16   : > { %2054 = vmatpush3.bf16.msra.mxu0 %v2399_v10  ;;  %v2416_v27 = vld [vmem:[%s3274_s1 + $0x88] sm:$0xff]   ;;  %v2420_v31 = vld [vmem:[%s3274_s1 + $0x80] sm:$0xff]   ;;  %v288_v41 = vld [vmem:[%s2736_s26 + $0x10] sm:$0xff] }
  0x17   : > { %2118 = vmatpush3.bf16.msra.mxu1 %v2400_v11  ;;  %2055 = vmatprep.subr.bf16.mxu0 %v2401_v12  ;;  %v287_v32 = vld [vmem:[%s2736_s26 + $0x8] sm:$0xff]  ;;  %v294_v33 = vld [vmem:[%s2736_s26 + $0x40] sm:$0xff]  ;;  %v2421_v44 = vld [vmem:[%s3274_s1 + $0x178] sm:$0xff]  }
  0x18   : > { %2119 = vmatprep.subr.bf16.mxu1 %v2402_v13  ;;  %v498_v35 = vpack.c.bf16 %v294_v33, %v287_v32  ;;  %v286_v37 = vld [vmem:[%s2736_s26] sm:$0xff]  ;;  %v295_v42 = vld [vmem:[%s2736_s26 + $0x48] sm:$0xff]  ;;  %1007 = vmatprep.mubr.bf16.mxu1 %v500_v39  ;;  %v2422_v45 = vld [vmem:[%s3274_s1 + $0x138] sm:$0xff]  }
  0x19   : > { %v497_v40 = vpack.c.bf16 %v293_v38, %v286_v37  ;;  %v499_v43 = vpack.c.bf16 %v295_v42, %v288_v41  ;;  %v301_v46 = vld [vmem:[%s2736_s26 + $0x78] sm:$0xff]  ;;  %v308_v47 = vld [vmem:[%s2736_s26 + $0xb0] sm:$0xff]  ;;  %v303_v48 = vld [vmem:[%s2736_s26 + $0x88] sm:$0xff] }
  0x1a   : > { %2056 = vmatpush3.bf16.msra.mxu0 %v2403_v14  ;;  %910 = vmatprep.mubr.bf16.mxu0 %v498_v35  ;;  %v310_v49 = vld [vmem:[%s2736_s26 + $0xc0] sm:$0xff]  ;;  %v505_v50 = vpack.c.bf16 %v308_v47, %v301_v46  ;;  %v300_v52 = vld [vmem:[%s2736_s26 + $0x70] sm:$0xff]  ;;  %v307_v53 = vld [vmem:[%s2736_s26 + $0xa8] sm:$0xff] }
  0x1b   : > { %2120 = vmatpush3.bf16.msra.mxu1 %v2404_v15  ;;  %2057 = vmatprep.subr.bf16.mxu0 %v2405_v16  ;;  %v507_v51 = vpack.c.bf16 %v310_v49, %v303_v48  ;;  %v302_v54 = vld [vmem:[%s2736_s26 + $0x80] sm:$0xff]  ;;  %v309_v55 = vld [vmem:[%s2736_s26 + $0xb8] sm:$0xff]  ;;  %v504_v56 = vpack.c.bf16 %v307_v53, %v300_v52  ;;  %v2423_v57 = vld [vmem:[%s3274_s1 + $0x170] sm:$0xff]  }
  0x1c   : > { %2121 = vmatprep.subr.bf16.mxu1 %v2406_v17  ;;  %v506_v58 = vpack.c.bf16 %v309_v55, %v302_v54  ;;  %v2424_v59 = vld [vmem:[%s3274_s1 + $0x130] sm:$0xff]   ;;  %v315_v60 = vld [vmem:[%s2736_s26 + $0xe8] sm:$0xff]  ;;  %v322_v61 = vld [vmem:[%s2736_s26 + $0x120] sm:$0xff] }
  0x1d   : > { %v512_v62 = vpack.c.bf16 %v322_v61, %v315_v60  ;;  %v317_v63 = vld [vmem:[%s2736_s26 + $0xf8] sm:$0xff]  ;;  %v324_v0 = vld [vmem:[%s2736_s26 + $0x130] sm:$0xff]  ;;  %v314_v2 = vld [vmem:[%s2736_s26 + $0xe0] sm:$0xff] }
  0x1e   : > { %2058 = vmatpush3.bf16.msra.mxu0 %v2407_v18  ;;  %v514_v1 = vpack.c.bf16 %v324_v0, %v317_v63  ;;  %v321_v3 = vld [vmem:[%s2736_s26 + $0x118] sm:$0xff]  ;;  %v316_v4 = vld [vmem:[%s2736_s26 + $0xf0] sm:$0xff]  ;;  %v2425_v5 = vld [vmem:[%s3274_s1 + $0x168] sm:$0xff]  }
  0x1f   : > { %2122 = vmatpush3.bf16.msra.mxu1 %v2408_v19  ;;  %2059 = vmatprep.subr.bf16.mxu0 %v2409_v20  ;;  %v2426_v6 = vld [vmem:[%s3274_s1 + $0x128] sm:$0xff]   ;;  %v329_v8 = vld [vmem:[%s2736_s26 + $0x158] sm:$0xff]  ;;  %v336_v9 = vld [vmem:[%s2736_s26 + $0x190] sm:$0xff]  ;;  %v511_v12 = vpack.c.bf16 %v321_v3, %v314_v2 }
  0x20   : > { %2123 = vmatprep.subr.bf16.mxu1 %v2410_v21  ;;  %v323_v7 = vld [vmem:[%s2736_s26 + $0x128] sm:$0xff]  ;;  %v338_v11 = vld [vmem:[%s2736_s26 + $0x1a0] sm:$0xff]  ;;  %v519_v14 = vpack.c.bf16 %v336_v9, %v329_v8  ;;  %v328_v18 = vld [vmem:[%s2736_s26 + $0x150] sm:$0xff] }
  0x21   : > { %v331_v10 = vld [vmem:[%s2736_s26 + $0x168] sm:$0xff]  ;;  %v513_v13 = vpack.c.bf16 %v323_v7, %v316_v4  ;;  %v2427_v15 = vld [vmem:[%s3274_s1 + $0x160] sm:$0xff]   ;;  %v337_v21 = vld [vmem:[%s2736_s26 + $0x198] sm:$0xff] }
  0x22   : > { %2060 = vmatpush3.bf16.msra.mxu0 %v2411_v22  ;;  %v521_v16 = vpack.c.bf16 %v338_v11, %v331_v10  ;;  %v2428_v17 = vld [vmem:[%s3274_s1 + $0x120] sm:$0xff]   ;;  %v335_v19 = vld [vmem:[%s2736_s26 + $0x188] sm:$0xff]  ;;  %v2431_v32 = vld [vmem:[%s3274_s1 + $0x150] sm:$0xff]  }
  0x23   : > { %2124 = vmatpush3.bf16.msra.mxu1 %v2412_v23  ;;  %2061 = vmatprep.subr.bf16.mxu0 %v2413_v24  ;;  %v330_v20 = vld [vmem:[%s2736_s26 + $0x160] sm:$0xff]  ;;  %v343_v22 = vld [vmem:[%s2736_s26 + $0x1c8] sm:$0xff]  ;;  %v2429_v24 = vld [vmem:[%s3274_s1 + $0x158] sm:$0xff]  }
  0x24   : > { %2125 = vmatprep.subr.bf16.mxu1 %v2414_v25  ;;  %v350_v23 = vld [vmem:[%s2736_s26 + $0x200] sm:$0xff]  ;;  %v345_v25 = vld [vmem:[%s2736_s26 + $0x1d8] sm:$0xff]  ;;  %v2432_v33 = vld [vmem:[%s3274_s1 + $0x110] sm:$0xff]  }
  0x25   : > { %v342_v34 = vld [vmem:[%s2736_s26 + $0x1c0] sm:$0xff]  ;;  %v349_v35 = vld [vmem:[%s2736_s26 + $0x1f8] sm:$0xff]  ;;  %v344_v36 = vld [vmem:[%s2736_s26 + $0x1d0] sm:$0xff] }
  0x26   : > { %2062 = vmatpush3.bf16.msra.mxu0 %v2415_v26  ;;  %v352_v26 = vld [vmem:[%s2736_s26 + $0x210] sm:$0xff]  ;;  %v351_v37 = vld [vmem:[%s2736_s26 + $0x208] sm:$0xff]  ;;  %v357_v38 = vld [vmem:[%s2736_s26 + $0x238] sm:$0xff] }
  0x27   : > { %2126 = vmatpush3.bf16.msra.mxu1 %v2416_v27  ;;  %2063 = vmatprep.subr.bf16.mxu0 %v2417_v28  ;;  %v2430_v27 = vld [vmem:[%s3274_s1 + $0x118] sm:$0xff]   ;;  %v518_v28 = vpack.c.bf16 %v335_v19, %v328_v18  ;;  %v364_v39 = vld [vmem:[%s2736_s26 + $0x270] sm:$0xff]  ;;  %v366_v41 = vld [vmem:[%s2736_s26 + $0x280] sm:$0xff] }
  0x28   : > { %2127 = vmatprep.subr.bf16.mxu1 %v2418_v29  ;;  %v520_v29 = vpack.c.bf16 %v337_v21, %v330_v20  ;;  %v2433_v42 = vld [vmem:[%s3274_s1 + $0x148] sm:$0xff]   ;;  %v533_v46 = vpack.c.bf16 %v364_v39, %v357_v38  ;;  %v356_v48 = vld [vmem:[%s2736_s26 + $0x230] sm:$0xff]  ;;  %v2435_v49 = vld [vmem:[%s3274_s1 + $0x140] sm:$0xff]  }
  0x29   : > { %v2436_v52 = vld [vmem:[%s3274_s1 + $0x100] sm:$0xff]   ;;  %v365_v53 = vld [vmem:[%s2736_s26 + $0x278] sm:$0xff]  ;;  %v371_v54 = vld [vmem:[%s2736_s26 + $0x2a8] sm:$0xff] }
  0x2a   : > { %2064 = vmatpush3.bf16.msra.mxu0 %v2419_v30  ;;  %v526_v30 = vpack.c.bf16 %v350_v23, %v343_v22  ;;  %v378_v55 = vld [vmem:[%s2736_s26 + $0x2e0] sm:$0xff]  ;;  %v377_v0 = vld [vmem:[%s2736_s26 + $0x2d8] sm:$0xff]  ;;  %v379_v2 = vld [vmem:[%s2736_s26 + $0x2e8] sm:$0xff] }
  0x2b   : > { %2128 = vmatpush3.bf16.msra.mxu1 %v2420_v31  ;;  %2177 = vmatprep.subr.bf16.mxu0 %v2421_v44  ;;  %v528_v31 = vpack.c.bf16 %v352_v26, %v345_v25  ;;  %v540_v60 = vpack.c.bf16 %v378_v55, %v371_v54  ;;  %v370_v63 = vld [vmem:[%s2736_s26 + $0x2a0] sm:$0xff]  ;;  %v385_v3 = vld [vmem:[%s2736_s26 + $0x318] sm:$0xff]  ;;  %v392_v4 = vld [vmem:[%s2736_s26 + $0x350] sm:$0xff] }
  0x2c   : > { %2364 = vmatprep.subr.bf16.mxu1 %v2421_v44  ;;  %v2434_v44 = vld [vmem:[%s3274_s1 + $0x108] sm:$0xff]   ;;  %v539_v7 = vpack.c.bf16 %v377_v0, %v370_v63  ;;  %v547_v9 = vpack.c.bf16 %v392_v4, %v385_v3  ;;  %v384_v11 = vld [vmem:[%s2736_s26 + $0x310] sm:$0xff]  ;;  %v382_v18 = vld [vmem:[%s2736_s26 + $0x300] sm:$0xff] }
  0x2d   : > { %911 = vmatmul.mubr.bf16.vlgmr.msra.gmra.mxu0 %v497_v40  ;;  %v359_v40 = vld [vmem:[%s2736_s26 + $0x248] sm:$0xff]  ;;  %v290_v23 = vld [vmem:[%s2736_s26 + $0x20] sm:$0xff]  ;;  %v381_v26 = vld [vmem:[%s2736_s26 + $0x2f8] sm:$0xff] }
  0x2e   : > { %1008 = vmatmul.mubr.bf16.vlgmr.msra.gmra.mxu1 %v499_v43  ;;  %2178 = vmatpush3.bf16.msra.mxu0 %v2422_v45  ;;  %v525_v43 = vpack.c.bf16 %v349_v35, %v342_v34  ;;  %v535_v47 = vpack.c.bf16 %v366_v41, %v359_v40  ;;  %v374_v25 = vld [vmem:[%s2736_s26 + $0x2c0] sm:$0xff]  ;;  %v304_v35 = vld [vmem:[%s2736_s26 + $0x90] sm:$0xff]  ;;  %v395_v38 = vld [vmem:[%s2736_s26 + $0x368] sm:$0xff] }
  0x2f   : > { %2372 = vmatpush3.bf16.msra.mxu1 %v2422_v45  ;;  %918 = vmatprep.mubr.bf16.mxu0 %v505_v50  ;;  %v527_v45 = vpack.c.bf16 %v351_v37, %v344_v36  ;;  %v363_v50 = vld [vmem:[%s2736_s26 + $0x268] sm:$0xff]  ;;  %v388_v37 = vld [vmem:[%s2736_s26 + $0x330] sm:$0xff]  ;;  %v326_v40 = vld [vmem:[%s2736_s26 + $0x140] sm:$0xff] }
  0x30   : > { %1015 = vmatprep.mubr.bf16.mxu1 %v507_v51  ;;  %2179 = vmatprep.subr.bf16.mxu0 %v2423_v57  ;;  %v358_v51 = vld [vmem:[%s2736_s26 + $0x240] sm:$0xff]  ;;  %v311_v36 = vld [vmem:[%s2736_s26 + $0xc8] sm:$0xff]  ;;  %v292_v41 = vld [vmem:[%s2736_s26 + $0x30] sm:$0xff] }
  0x31   : > { %2365 = vmatprep.subr.bf16.mxu1 %v2423_v57  ;;  %v380_v57 = vld [vmem:[%s2736_s26 + $0x2f0] sm:$0xff]  ;;  %v319_v39 = vld [vmem:[%s2736_s26 + $0x108] sm:$0xff]  ;;  %v354_v0 = vld [vmem:[%s2736_s26 + $0x220] sm:$0xff] }
  0x32   : > { %2180 = vmatpush3.bf16.msra.mxu0 %v2424_v59  ;;  %v327_v54 = vld [vmem:[%s2736_s26 + $0x148] sm:$0xff] }
  0x33   : > { %2373 = vmatpush3.bf16.msra.mxu1 %v2424_v59  ;;  %2181 = vmatprep.subr.bf16.mxu0 %v2425_v5  ;;  %v534_v59 = vpack.c.bf16 %v365_v53, %v358_v51  ;;  %v333_v51 = vld [vmem:[%s2736_s26 + $0x178] sm:$0xff]  ;;  %v320_v53 = vld [vmem:[%s2736_s26 + $0x110] sm:$0xff]  ;;  %v347_v63 = vld [vmem:[%s2736_s26 + $0x1e8] sm:$0xff] }
  0x34   : > { %2366 = vmatprep.subr.bf16.mxu1 %v2425_v5  ;;  %v387_v5 = vld [vmem:[%s2736_s26 + $0x328] sm:$0xff] }
  0x35   : > { %919 = vmatmul.mubr.bf16.gmra.mxu0 %v504_v56  ;;  %v373_v56 = vld [vmem:[%s2736_s26 + $0x2b8] sm:$0xff] }
  0x36   : > { %1016 = vmatmul.mubr.bf16.gmra.mxu1 %v506_v58  ;;  %926 = vmatprep.mubr.bf16.mxu0 %v512_v62  ;;  %v532_v58 = vpack.c.bf16 %v363_v50, %v356_v48  ;;  %v542_v61 = vpack.c.bf16 %v380_v57, %v373_v56  ;;  %v2437_v62 = vld [vmem:[%s3274_s1 + $0x180] sm:$0xff]   ;;  %v325_v48 = vld [vmem:[%s2736_s26 + $0x138] sm:$0xff] }
  0x37   : > { %1023 = vmatprep.mubr.bf16.mxu1 %v514_v1  ;;  %2182 = vmatpush3.bf16.msra.mxu0 %v2426_v6  ;;  %v372_v1 = vld [vmem:[%s2736_s26 + $0x2b0] sm:$0xff]  ;;  %v313_v50 = vld [vmem:[%s2736_s26 + $0xd8] sm:$0xff] }
  0x38   : > { %2374 = vmatpush3.bf16.msra.mxu1 %v2426_v6  ;;  %2183 = vmatprep.subr.bf16.mxu0 %v2427_v15  ;;  %v394_v6 = vld [vmem:[%s2736_s26 + $0x360] sm:$0xff]  ;;  %v541_v8 = vpack.c.bf16 %v379_v2, %v372_v1  ;;  %v348_v1 = vld [vmem:[%s2736_s26 + $0x1f0] sm:$0xff]  ;;  %v355_v2 = vld [vmem:[%s2736_s26 + $0x228] sm:$0xff] }
  0x39   : > { %2367 = vmatprep.subr.bf16.mxu1 %v2427_v15  ;;  %v549_v10 = vpack.c.bf16 %v394_v6, %v387_v5  ;;  %v291_v15 = vld [vmem:[%s2736_s26 + $0x28] sm:$0xff]  ;;  %v530_v5 = vpack.c.bf16 %v354_v0, %v347_v63  ;;  %v531_v6 = vpack.c.bf16 %v355_v2, %v348_v1 }
  0x3b   : > { %2184 = vmatpush3.bf16.msra.mxu0 %v2428_v17 }
  0x3c   : > { %2375 = vmatpush3.bf16.msra.mxu1 %v2428_v17  ;;  %2185 = vmatprep.subr.bf16.mxu0 %v2429_v24  ;;  %v375_v17 = vld [vmem:[%s2736_s26 + $0x2c8] sm:$0xff] }
  0x3d   : > { %927 = vmatmul.mubr.bf16.gmra.mxu0 %v511_v12  ;;  %2368 = vmatprep.subr.bf16.mxu1 %v2429_v24  ;;  %v391_v12 = vld [vmem:[%s2736_s26 + $0x348] sm:$0xff]  ;;  %v544_v22 = vpack.c.bf16 %v382_v18, %v375_v17  ;;  %v297_v24 = vld [vmem:[%s2736_s26 + $0x58] sm:$0xff] }
  0x3e   : > { %1024 = vmatmul.mubr.bf16.gmra.mxu1 %v513_v13  ;;  %934 = vmatprep.mubr.bf16.mxu0 %v519_v14  ;;  %v386_v13 = vld [vmem:[%s2736_s26 + $0x320] sm:$0xff]  ;;  %v393_v14 = vld [vmem:[%s2736_s26 + $0x358] sm:$0xff]  ;;  %v546_v19 = vpack.c.bf16 %v391_v12, %v384_v11  ;;  %v368_v12 = vld [vmem:[%s2736_s26 + $0x290] sm:$0xff] }
  0x3f   : > { %1031 = vmatprep.mubr.bf16.mxu1 %v521_v16  ;;  %2186 = vmatpush3.bf16.msra.mxu0 %v2430_v27  ;;  %v298_v16 = vld [vmem:[%s2736_s26 + $0x60] sm:$0xff]  ;;  %v548_v20 = vpack.c.bf16 %v393_v14, %v386_v13  ;;  %v361_v11 = vld [vmem:[%s2736_s26 + $0x258] sm:$0xff]  ;;  %v376_v13 = vld [vmem:[%s2736_s26 + $0x2d0] sm:$0xff] }
  0x40   : > { %2376 = vmatpush3.bf16.msra.mxu1 %v2430_v27  ;;  %2187 = vmatprep.subr.bf16.mxu0 %v2431_v32  ;;  %v502_v21 = vpack.c.bf16 %v298_v16, %v291_v15  ;;  %v305_v27 = vld [vmem:[%s2736_s26 + $0x98] sm:$0xff]  ;;  %v383_v14 = vld [vmem:[%s2736_s26 + $0x308] sm:$0xff]  ;;  %v537_v17 = vpack.c.bf16 %v368_v12, %v361_v11 }
  0x41   : > { %2369 = vmatprep.subr.bf16.mxu1 %v2431_v32  ;;  %v543_v32 = vpack.c.bf16 %v381_v26, %v374_v25  ;;  %v545_v18 = vpack.c.bf16 %v383_v14, %v376_v13  ;;  %v2438_v25 = vld [vmem:[%s3276_s3 + $0x38] sm:$0xff]   ;;  %v2439_v26 = vld [vmem:[%s3276_s3 + $0x30] sm:$0xff]  }
  0x43   : > { %2188 = vmatpush3.bf16.msra.mxu0 %v2432_v33 }
  0x44   : > { %2377 = vmatpush3.bf16.msra.mxu1 %v2432_v33  ;;  %2189 = vmatprep.subr.bf16.mxu0 %v2433_v42 }
  0x45   : > { %935 = vmatmul.mubr.bf16.gmra.mxu0 %v518_v28  ;;  %2370 = vmatprep.subr.bf16.mxu1 %v2433_v42  ;;  %v312_v28 = vld [vmem:[%s2736_s26 + $0xd0] sm:$0xff]  ;;  %v299_v42 = vld [vmem:[%s2736_s26 + $0x68] sm:$0xff] }
  0x46   : > { %1032 = vmatmul.mubr.bf16.gmra.mxu1 %v520_v29  ;;  %942 = vmatprep.mubr.bf16.mxu0 %v526_v30  ;;  %v389_v29 = vld [vmem:[%s2736_s26 + $0x338] sm:$0xff]  ;;  %v396_v30 = vld [vmem:[%s2736_s26 + $0x370] sm:$0xff]  ;;  %v509_v33 = vpack.c.bf16 %v312_v28, %v305_v27  ;;  %v2440_v27 = vld [vmem:[%s3276_s3 + $0x28] sm:$0xff]  }
  0x47   : > { %1039 = vmatprep.mubr.bf16.mxu1 %v528_v31  ;;  %2190 = vmatpush3.bf16.msra.mxu0 %v2434_v44  ;;  %v501_v31 = vpack.c.bf16 %v297_v24, %v290_v23  ;;  %v551_v34 = vpack.c.bf16 %v396_v30, %v389_v29  ;;  %v2441_v28 = vld [vmem:[%s3276_s3 + $0x20] sm:$0xff]   ;;  %v2442_v29 = vld [vmem:[%s3276_s3 + $0x18] sm:$0xff]   ;;  %v2443_v30 = vld [vmem:[%s3276_s3 + $0x10] sm:$0xff]  }
  0x48   : > { %2378 = vmatpush3.bf16.msra.mxu1 %v2434_v44  ;;  %2191 = vmatprep.subr.bf16.mxu0 %v2435_v49  ;;  %v550_v44 = vpack.c.bf16 %v395_v38, %v388_v37 }
  0x49   : > { %2371 = vmatprep.subr.bf16.mxu1 %v2435_v49  ;;  %v306_v49 = vld [vmem:[%s2736_s26 + $0xa0] sm:$0xff] }
  0x4a   : > { %v510_v56 = vpack.c.bf16 %v313_v50, %v306_v49 }
  0x4b   : > { %2192 = vmatpush3.bf16.msra.mxu0 %v2436_v52 }
  0x4c   : > { %2379 = vmatpush3.bf16.msra.mxu1 %v2436_v52  ;;  %v340_v52 = vld [vmem:[%s2736_s26 + $0x1b0] sm:$0xff] }
  0x4d   : > { %943 = vmatmul.mubr.bf16.gmra.mxu0 %v525_v43  ;;  %2282 = vmatprep.subr.bf16.mxu1 %v2437_v62  ;;  %v508_v43 = vpack.c.bf16 %v311_v36, %v304_v35  ;;  %v523_v57 = vpack.c.bf16 %v340_v52, %v333_v51  ;;  %v2942_v35 = vld [vmem:[%s3275_s2] ss:$0 sm:$0xff] }
  0x4e   : > { %1040 = vmatmul.mubr.bf16.gmra.mxu1 %v527_v45  ;;  %950 = vmatprep.mubr.bf16.mxu0 %v533_v46  ;;  %v516_v45 = vpack.c.bf16 %v326_v40, %v319_v39  ;;  %v503_v46 = vpack.c.bf16 %v299_v42, %v292_v41 }
  0x4f   : > { %1047 = vmatprep.mubr.bf16.mxu1 %v535_v47  ;;  %v318_v47 = vld [vmem:[%s2736_s26 + $0x100] sm:$0xff] }
  0x50   : > { %v515_v55 = vpack.c.bf16 %v325_v48, %v318_v47 }
  0x55   : > { %951 = vmatmul.mubr.bf16.gmra.mxu0 %v532_v58  ;;  %v517_v58 = vpack.c.bf16 %v327_v54, %v320_v53 }
  0x56   : > { %1048 = vmatmul.mubr.bf16.gmra.mxu1 %v534_v59  ;;  %958 = vmatprep.mubr.bf16.mxu0 %v540_v60  ;;  %v332_v59 = vld [vmem:[%s2736_s26 + $0x170] sm:$0xff]  ;;  %v339_v60 = vld [vmem:[%s2736_s26 + $0x1a8] sm:$0xff] }
  0x57   : > { %1055 = vmatprep.mubr.bf16.mxu1 %v542_v61  ;;  %v334_v61 = vld [vmem:[%s2736_s26 + $0x180] sm:$0xff]  ;;  %v522_v3 = vpack.c.bf16 %v339_v60, %v332_v59 }
  0x5d   : > { %959 = vmatmul.mubr.bf16.gmra.mxu0 %v539_v7  ;;  %v346_v7 = vld [vmem:[%s2736_s26 + $0x1e0] sm:$0xff] }
  0x5e   : > { %1056 = vmatmul.mubr.bf16.gmra.mxu1 %v541_v8  ;;  %966 = vmatprep.mubr.bf16.mxu0 %v547_v9  ;;  %v353_v8 = vld [vmem:[%s2736_s26 + $0x218] sm:$0xff]  ;;  %v362_v9 = vld [vmem:[%s2736_s26 + $0x260] sm:$0xff] }
  0x5f   : > { %1063 = vmatprep.mubr.bf16.mxu1 %v549_v10  ;;  %v369_v10 = vld [vmem:[%s2736_s26 + $0x298] sm:$0xff]  ;;  %v529_v15 = vpack.c.bf16 %v353_v8, %v346_v7 }
  0x60   : > { %v538_v16 = vpack.c.bf16 %v369_v10, %v362_v9  ;;  %v2446_v7 = vld [vmem:[%s3278_s5 + $0x38] sm:$0xff]  }
  0x61   : > { %2332 = vmatprep.subr.bf16.mxu0 %v2446_v7 }
  0x65   : > { %967 = vmatmul.mubr.bf16.gmra.mxu0 %v546_v19  ;;  %v360_v19 = vld [vmem:[%s2736_s26 + $0x250] sm:$0xff] }
  0x66   : > { %1064 = vmatmul.mubr.bf16.gmra.mxu1 %v548_v20  ;;  %1104 = vmatprep.mubr.bf16.mxu0 %v502_v21  ;;  %v367_v20 = vld [vmem:[%s2736_s26 + $0x288] sm:$0xff]  ;;  %v390_v21 = vld [vmem:[%s2736_s26 + $0x340] sm:$0xff] }
  0x67   : > { %1152 = vmatprep.mubr.bf16.mxu1 %v544_v22  ;;  %v397_v22 = vld [vmem:[%s2736_s26 + $0x378] sm:$0xff]  ;;  %v536_v23 = vpack.c.bf16 %v367_v20, %v360_v19 }
  0x68   : > { %v552_v24 = vpack.c.bf16 %v397_v22, %v390_v21 }
  0x6d   : > { %1105 = vmatmul.mubr.bf16.vlgmr.msra.gmra.mxu0 %v501_v31  ;;  %v2444_v31 = vld [vmem:[%s3276_s3 + $0x8] sm:$0xff]  }
  0x6e   : > { %1153 = vmatmul.mubr.bf16.vlgmr.msra.gmra.mxu1 %v543_v32  ;;  %1112 = vmatprep.mubr.bf16.mxu0 %v509_v33  ;;  %v2445_v32 = vld [vmem:[%s3276_s3] sm:$0xff]  }
  0x6f   : > { %1160 = vmatprep.mubr.bf16.mxu1 %v551_v34  ;;  %2283 = vmatpush3.bf16.msra.mxu1 %v2437_v62  ;;  %v341_v62 = vld [vmem:[%s2736_s26 + $0x1b8] sm:$0xff] }
  0x70   : > { %v524_v4 = vpack.c.bf16 %v341_v62, %v334_v61  ;;  %2300 = vmatprep.subr.bf16.mxu1 %v2438_v25  ;;  %2333 = vmatpush3.bf16.msra.mxu0 %v2446_v7 }
  0x75   : > { %1113 = vmatmul.mubr.bf16.gmra.mxu0 %v508_v43 }
  0x76   : > { %1161 = vmatmul.mubr.bf16.gmra.mxu1 %v550_v44  ;;  %1120 = vmatprep.mubr.bf16.mxu0 %v516_v45 }
  0x77   : > { %2284 = vmatprep.mubr.msk.bf16.mxu1 %vm853_vm0, %v503_v46 }
  0x7d   : > { %1121 = vmatmul.mubr.bf16.gmra.mxu0 %v515_v55 }
  0x7e   : > { %2285 = vmatmul.mubr.msk.bf16.vlgmr.msra.gmra.mxu1 %vm853_vm0, %v510_v56  ;;  %1128 = vmatprep.mubr.bf16.mxu0 %v523_v57 }
  0x7f   : > { %2288 = vmatprep.mubr.msk.bf16.mxu1 %vm853_vm0, %v517_v58  ;;  %2301 = vmatpush3.bf16.msra.mxu1 %v2438_v25 }
  0x80   : > { %2302 = vmatprep.subr.bf16.mxu1 %v2439_v26 }
  0x83   : > { %2303 = vmatpush3.bf16.msra.mxu1 %v2439_v26 }
  0x84   : > { %2304 = vmatprep.subr.bf16.mxu1 %v2440_v27 }
  0x85   : > { %1129 = vmatmul.mubr.bf16.gmra.mxu0 %v522_v3 }
  0x86   : > { %2289 = vmatmul.mubr.msk.bf16.gmra.mxu1 %vm853_vm0, %v524_v4  ;;  %1136 = vmatprep.mubr.bf16.mxu0 %v530_v5 }
  0x87   : > { %2292 = vmatprep.mubr.msk.bf16.mxu1 %vm853_vm0, %v531_v6  ;;  %2305 = vmatpush3.bf16.msra.mxu1 %v2440_v27 }
  0x88   : > { %2306 = vmatprep.subr.bf16.mxu1 %v2441_v28 }
  0x8b   : > { %2307 = vmatpush3.bf16.msra.mxu1 %v2441_v28 }
  0x8c   : > { %2308 = vmatprep.subr.bf16.mxu1 %v2442_v29 }
  0x8d   : > { %1137 = vmatmul.mubr.bf16.gmra.mxu0 %v529_v15 }
  0x8e   : > { %2293 = vmatmul.mubr.msk.bf16.gmra.mxu1 %vm853_vm0, %v538_v16  ;;  %1144 = vmatprep.mubr.bf16.mxu0 %v537_v17 }
  0x8f   : > { %2296 = vmatprep.mubr.msk.bf16.mxu1 %vm853_vm0, %v545_v18  ;;  %2309 = vmatpush3.bf16.msra.mxu1 %v2442_v29 }
  0x90   : > { %2310 = vmatprep.subr.bf16.mxu1 %v2443_v30 }
  0x93   : > { %2311 = vmatpush3.bf16.msra.mxu1 %v2443_v30 }
  0x94   : > { %2312 = vmatprep.subr.bf16.mxu1 %v2444_v31 }
  0x95   : > { %1145 = vmatmul.mubr.bf16.gmra.mxu0 %v536_v23 }
  0x96   : > { %2297 = vmatmul.mubr.msk.bf16.gmra.mxu1 %vm853_vm0, %v552_v24 }
  0x97   : > { %2313 = vmatpush3.bf16.msra.mxu1 %v2444_v31 }
  0x98   : > { %2314 = vmatprep.subr.bf16.mxu1 %v2445_v32 }
  0x9b   : > { %2315 = vmatpush3.bf16.msra.mxu1 %v2445_v32 }
  0xed   : > { %v2065_v33 = vpop.f32.mrf.mxu0 }
  0xee   : > { %v2129_v34 = vpop.f32.mrf.mxu1 }
  0xef   : > { %v2066_v36 = vpop.f32.mrf.mxu0 }
  0xf0   : > { %v2067_v37 = vadd.f32 %v2066_v36, %v2065_v33  ;;  %v2130_v38 = vpop.f32.mrf.mxu1 }
  0xf1   : > { %v2131_v39 = vadd.f32 %v2130_v38, %v2129_v34  ;;  %v2068_v40 = vpop.f32.mrf.mxu0 }
  0xf2   : > { %v913_v41 = vadd.f32 %v2067_v37, %v2942_v35  ;;  %v2132_v42 = vpop.f32.mrf.mxu1 }
  0xf3   : > { %v2069_v43 = vpop.f32.mrf.mxu0 }
  0xf4   : > { %v2945_v44 = vadd.f32 %v2131_v39, %v913_v41  ;;  %v2070_v45 = vadd.f32 %v2069_v43, %v2068_v40  ;;  %v2133_v46 = vpop.f32.mrf.mxu1 }
  0xf5   : > { %v2134_v47 = vadd.f32 %v2133_v46, %v2132_v42  ;;  %v2071_v48 = vpop.f32.mrf.mxu0 }
  0xf6   : > { %v916_v49 = vadd.f32 %v2070_v45, %v2942_v35  ;;  %v2135_v50 = vpop.f32.mrf.mxu1 }
  0xf7   : > { %v2072_v51 = vpop.f32.mrf.mxu0 }
  0xf8   : > { %v2948_v52 = vadd.f32 %v2134_v47, %v916_v49  ;;  %v2073_v53 = vadd.f32 %v2072_v51, %v2071_v48  ;;  %v2136_v54 = vpop.f32.mrf.mxu1 }
  0xf9   : > { %v2137_v55 = vadd.f32 %v2136_v54, %v2135_v50  ;;  %v2074_v56 = vpop.f32.mrf.mxu0 }
  0xfa   : > { %v921_v57 = vadd.f32 %v2073_v53, %v2942_v35  ;;  %v2138_v58 = vpop.f32.mrf.mxu1 }
  0xfb   : > { %v2075_v59 = vpop.f32.mrf.mxu0 }
  0xfc   : > { %v2951_v60 = vadd.f32 %v2137_v55, %v921_v57  ;;  %v2076_v61 = vadd.f32 %v2075_v59, %v2074_v56  ;;  %v2139_v62 = vpop.f32.mrf.mxu1 }
  0xfd   : > { %v2140_v63 = vadd.f32 %v2139_v62, %v2138_v58  ;;  %v2077_v0 = vpop.f32.mrf.mxu0 }
  0xfe   : > { %v924_v1 = vadd.f32 %v2076_v61, %v2942_v35  ;;  %v2141_v2 = vpop.f32.mrf.mxu1 }
  0xff   : > { %v2078_v3 = vpop.f32.mrf.mxu0 }
 0x100   : > { %v2954_v4 = vadd.f32 %v2140_v63, %v924_v1  ;;  %v2079_v5 = vadd.f32 %v2078_v3, %v2077_v0  ;;  %v2142_v6 = vpop.f32.mrf.mxu1 }
 0x101   : > { %v2143_v8 = vadd.f32 %v2142_v6, %v2141_v2  ;;  %v2080_v9 = vpop.f32.mrf.mxu0 }
 0x102   : > { %v929_v10 = vadd.f32 %v2079_v5, %v2942_v35  ;;  %v2144_v11 = vpop.f32.mrf.mxu1 }
 0x103   : > { %v2081_v12 = vpop.f32.mrf.mxu0 }
 0x104   : > { %v2960_v13 = vadd.f32 %v2143_v8, %v929_v10  ;;  %v2082_v14 = vadd.f32 %v2081_v12, %v2080_v9  ;;  %v2145_v15 = vpop.f32.mrf.mxu1 }
 0x105   : > { %v2146_v16 = vadd.f32 %v2145_v15, %v2144_v11  ;;  %v2083_v17 = vpop.f32.mrf.mxu0 }
 0x106   : > { %v932_v18 = vadd.f32 %v2082_v14, %v2942_v35  ;;  %v2147_v19 = vpop.f32.mrf.mxu1 }
 0x107   : > { %v2084_v20 = vpop.f32.mrf.mxu0 }
 0x108   : > { %v2963_v21 = vadd.f32 %v2146_v16, %v932_v18  ;;  %v2085_v22 = vadd.f32 %v2084_v20, %v2083_v17  ;;  %v2148_v23 = vpop.f32.mrf.mxu1 }
 0x109   : > { %v2149_v24 = vadd.f32 %v2148_v23, %v2147_v19  ;;  %v2965_v25 = vpop.f32.mrf.mxu0 }
 0x10a   : > { %v937_v26 = vadd.f32 %v2085_v22, %v2942_v35  ;;  %v2968_v27 = vpop.f32.mrf.mxu1 }
 0x10b   : > { %v2970_v28 = vpop.f32.mrf.mxu0 }
 0x10c   : > { %v2972_v29 = vadd.f32 %v2149_v24, %v937_v26  ;;  %v2974_v30 = vpop.f32.mrf.mxu1 }
 0x10d   : > { %v2089_v31 = vpop.f32.mrf.mxu0 }
 0x10e   : > { %v2153_v32 = vpop.f32.mrf.mxu1 }
 0x10f   : > { %v2090_v33 = vpop.f32.mrf.mxu0 }
 0x110   : > { %v2091_v34 = vadd.f32 %v2090_v33, %v2089_v31  ;;  %v2154_v36 = vpop.f32.mrf.mxu1 }
 0x111   : > { %v2155_v37 = vadd.f32 %v2154_v36, %v2153_v32  ;;  %v2976_v38 = vpop.f32.mrf.mxu0 }
 0x112   : > { %v945_v39 = vadd.f32 %v2091_v34, %v2942_v35  ;;  %v2979_v40 = vpop.f32.mrf.mxu1 }
 0x113   : > { %v2981_v41 = vpop.f32.mrf.mxu0 }
 0x114   : > { %v2983_v42 = vadd.f32 %v2155_v37, %v945_v39  ;;  %v2985_v43 = vpop.f32.mrf.mxu1 }
 0x115   : > { %v2095_v45 = vpop.f32.mrf.mxu0 }
 0x116   : > { %v2159_v46 = vpop.f32.mrf.mxu1 }
 0x117   : > { %v2096_v47 = vpop.f32.mrf.mxu0 }
 0x118   : > { %v2097_v48 = vadd.f32 %v2096_v47, %v2095_v45  ;;  %v2160_v49 = vpop.f32.mrf.mxu1 }
 0x119   : > { %v2161_v50 = vadd.f32 %v2160_v49, %v2159_v46  ;;  %v2987_v51 = vpop.f32.mrf.mxu0 }
 0x11a   : > { %v953_v53 = vadd.f32 %v2097_v48, %v2942_v35  ;;  %v2990_v54 = vpop.f32.mrf.mxu1 }
 0x11b   : > { %v2992_v55 = vpop.f32.mrf.mxu0 }
 0x11c   : > { %v2994_v56 = vadd.f32 %v2161_v50, %v953_v53  ;;  %v2996_v57 = vpop.f32.mrf.mxu1 }
 0x11d   : > { %v2998_v58 = vpop.f32.mrf.mxu0 }
 0x11e   : > { %3281 = vst [vmem:[#allocation2_spill] sm:$0xff] %v2994_v56  ;;  %v3000_v59 = vpop.f32.mrf.mxu1 }
 0x11f   : > { %v3002_v61 = vpop.f32.mrf.mxu0 }
 0x120   : > { %v3004_v62 = vpop.f32.mrf.mxu1 }
 0x121   : > { %v3006_v63 = vpop.f32.mrf.mxu0 }
 0x122   : > { %v3008_v0 = vpop.f32.mrf.mxu1 }
 0x123   : > { %v3010_v1 = vpop.f32.mrf.mxu0 }
 0x124   : > { %v3012_v2 = vpop.f32.mrf.mxu1 }
 0x125   : > { %v3014_v3 = vpop.f32.mrf.mxu0 }
 0x126   : > { %v3016_v5 = vpop.f32.mrf.mxu1 }
 0x127   : > { %v3018_v6 = vpop.f32.mrf.mxu0 }
 0x128   : > { %v3020_v7 = vpop.f32.mrf.mxu1 }
 0x129   : > { %v3022_v8 = vpop.f32.mrf.mxu0 }
 0x12a   : > { %v3024_v9 = vpop.f32.mrf.mxu1 }
 0x12b   : > { %v3026_v10 = vpop.f32.mrf.mxu0 }
 0x12c   : > { %v3028_v11 = vpop.f32.mrf.mxu1 }
 0x12d   : > { %v2193_v12 = vpop.f32.mrf.mxu0 }
 0x12e   : > { %v3030_v14 = vpop.f32.mrf.mxu1 }
 0x12f   : > { %v2194_v15 = vpop.f32.mrf.mxu0 }
 0x130   : > { %v3032_v16 = vpop.f32.mrf.mxu1  ;;  %v2195_v34 = vadd.f32 %v2194_v15, %v2193_v12  ;;  %v2088_v12 = vadd.f32 %v2970_v28, %v2965_v25 }
 0x131   : > { %v2196_v17 = vpop.f32.mrf.mxu0 }
 0x132   : > { %v3034_v18 = vpop.f32.mrf.mxu1  ;;  %v1107_v53 = vadd.f32 %v2195_v34, %v2945_v44 }
 0x133   : > { %v2197_v19 = vpop.f32.mrf.mxu0 }
 0x134   : > { %v3036_v20 = vpop.f32.mrf.mxu1  ;;  %v2198_v47 = vadd.f32 %v2197_v19, %v2196_v17 }
 0x135   : > { %v2199_v22 = vpop.f32.mrf.mxu0 }
 0x136   : > { %v3038_v23 = vpop.f32.mrf.mxu1 }
 0x137   : > { %3282 = vst [vmem:[#allocation3_spill] sm:$0xff] %v3038_v23  ;;  %v2200_v24 = vpop.f32.mrf.mxu0 }
 0x138   : > { %v3040_v26 = vpop.f32.mrf.mxu1  ;;  %v2201_v31 = vadd.f32 %v2200_v24, %v2199_v22 }
 0x139   : > { %3283 = vst [vmem:[#allocation4_spill] sm:$0xff] %v3040_v26  ;;  %v2202_v32 = vpop.f32.mrf.mxu0 }
 0x13a   : > { %v3042_v33 = vpop.f32.mrf.mxu1  ;;  %v1115_v46 = vadd.f32 %v2201_v31, %v2951_v60 }
 0x13b   : > { %v2203_v36 = vpop.f32.mrf.mxu0 }
 0x13c   : > { %v3044_v37 = vpop.f32.mrf.mxu1  ;;  %v2204_v39 = vadd.f32 %v2203_v36, %v2202_v32  ;;  %v1110_v32 = vadd.f32 %v2198_v47, %v2948_v52 }
 0x13d   : > { %v2205_v45 = vpop.f32.mrf.mxu0 }
 0x13e   : > { %v2286_v48 = vpop.f32.mrf.mxu1  ;;  %v1118_v23 = vadd.f32 %v2204_v39, %v2954_v4  ;;  %v2152_v4 = vadd.f32 %v2974_v30, %v2968_v27  ;;  %v2103_v27 = vadd.f32 %v3002_v61, %v2998_v58  ;;  %v2164_v58 = vadd.f32 %v2996_v57, %v2990_v54 }
 0x13f   : > { %v1212_v49 = vadd.f32 %v2286_v48, %v1115_v46  ;;  %v2206_v50 = vpop.f32.mrf.mxu0  ;;  %v2100_v48 = vadd.f32 %v2992_v55, %v2987_v51  ;;  %v2109_v54 = vadd.f32 %v3018_v6, %v3014_v3 }
 0x140   : > { %v1203_v56 = vpop.f32.mrf.mxu1  ;;  %v2207_v60 = vadd.f32 %v2206_v50, %v2205_v45 }
 0x141   : > { %v1268_v26 = vmul.f32 0.5, %v1212_v49  ;;  %v1204_v22 = vadd.f32 %v1203_v56, %v1107_v53  ;;  %v2208_v24 = vpop.f32.mrf.mxu0  ;;  %v940_v56 = vadd.f32 %v2088_v12, %v2942_v35 }
 0x142   : > { %v2287_v15 = vpop.f32.mrf.mxu1 }
 0x143   : > { %2454 = vtanh.f32 %v1268_v26  ;;  %v1266_v17 = vmul.f32 0.5, %v1204_v22  ;;  %v1215_v19 = vadd.f32 %v2287_v15, %v1118_v23  ;;  %v2209_v31 = vpop.f32.mrf.mxu0  ;;  %v1123_v26 = vadd.f32 %v2207_v60, %v2960_v13 }
 0x144   : > { %v1206_v36 = vpop.f32.mrf.mxu1  ;;  %v2210_v25 = vadd.f32 %v2209_v31, %v2208_v24  ;;  %v2094_v23 = vadd.f32 %v2981_v41, %v2976_v38  ;;  %v1037_v22 = vadd.f32 %v2152_v4, %v940_v56  ;;  %v2158_v41 = vadd.f32 %v2985_v43, %v2979_v40 }
 0x145   : > { %v1269_v46 = vmul.f32 0.5, %v1215_v19  ;;  %v1207_v44 = vadd.f32 %v1206_v36, %v1110_v32  ;;  %v2211_v34 = vpop.f32.mrf.mxu0  ;;  %2456 = vtanh.f32 %v1266_v17  ;;  %v956_v32 = vadd.f32 %v2100_v48, %v2942_v35 }
 0x146   : > { %v2290_v39 = vpop.f32.mrf.mxu1  ;;  %v1126_v12 = vadd.f32 %v2210_v25, %v2963_v21  ;;  %v948_v38 = vadd.f32 %v2094_v23, %v2942_v35  ;;  %v961_v60 = vadd.f32 %v2103_v27, %v2942_v35  ;;  %v2167_v21 = vadd.f32 %v3004_v62, %v3000_v59 }
 0x147   : > { %2458 = vtanh.f32 %v1269_v46  ;;  %v1267_v28 = vmul.f32 0.5, %v1207_v44  ;;  %v2212_v52 = vpop.f32.mrf.mxu0  ;;  %v2106_v40 = vadd.f32 %v3010_v1, %v3006_v63  ;;  %v2112_v59 = vadd.f32 %v3026_v10, %v3022_v8 }
 0x148   : > { %v2213_v45 = vadd.f32 %v2212_v52, %v2211_v34  ;;  %v1219_v47 = vpop.f32.mrf.mxu1  ;;  %v1045_v56 = vadd.f32 %v2158_v41, %v948_v38  ;;  %v2231_v62 = vadd.f32 %v3032_v16, %v3030_v14  ;;  %v3083_v63 = vadd.f32 %v2164_v58, %v956_v32  ;;  %v3284_v58 = vld [vmem:[#allocation3_spill] sm:$0xff] }
 0x149   : > { %2460 = vtanh.f32 %v1267_v28  ;;  %v1220_v49 = vadd.f32 %v1219_v47, %v1123_v26  ;;  %v2214_v50 = vpop.f32.mrf.mxu0  ;;  %v1058_v1 = vadd.f32 %v2167_v21, %v961_v60  ;;  %v964_v28 = vadd.f32 %v2106_v40, %v2942_v35 }
 0x14a   : > { %v1131_v30 = vadd.f32 %v2213_v45, %v2972_v29  ;;  %v2291_v53 = vpop.f32.mrf.mxu1  ;;  %v2170_v52 = vadd.f32 %v3012_v2, %v3008_v0  ;;  %v2173_v8 = vadd.f32 %v3020_v7, %v3016_v5  ;;  %v969_v26 = vadd.f32 %v2109_v54, %v2942_v35 }
 0x14b   : > { %v1270_v24 = vmul.f32 0.5, %v1220_v49  ;;  %v2215_v13 = vpop.f32.mrf.mxu0  ;;  %v972_v47 = vadd.f32 %v2112_v59, %v2942_v35  ;;  %v2176_v48 = vadd.f32 %v3028_v11, %v3024_v9  ;;  %v1155_v0 = vadd.f32 %v2231_v62, %v1058_v1 }
 0x14c   : > { %v1228_v51 = vadd.f32 %v2290_v39, %v1131_v30  ;;  %v2216_v55 = vadd.f32 %v2215_v13, %v2214_v50  ;;  %v1222_v15 = vpop.f32.mrf.mxu1  ;;  %v2234_v5 = vadd.f32 %v3036_v20, %v3034_v18  ;;  %v1061_v38 = vadd.f32 %v2170_v52, %v964_v28 }
 0x14d   : > { %2462 = vtanh.f32 %v1270_v24  ;;  %v1223_v29 = vadd.f32 %v1222_v15, %v1126_v12  ;;  %v2217_v61 = vpop.f32.mrf.mxu0 }
 0x14e   : > { %v1272_v17 = vmul.f32 0.5, %v1228_v51  ;;  %v1134_v19 = vadd.f32 %v2216_v55, %v1037_v22  ;;  %v3073_v31 = vpop.f32.mrf.mxu1  ;;  %v2240_v22 = vadd.f32 %v3044_v37, %v3042_v33  ;;  %v1069_v51 = vadd.f32 %v2176_v48, %v972_v47  ;;  %v3286_v37 = vld [vmem:[#allocation2_spill] sm:$0xff] }
 0x14f   : > { %v1271_v43 = vmul.f32 0.5, %v1223_v29  ;;  %v2218_v36 = vpop.f32.mrf.mxu0  ;;  %v3285_v29 = vld [vmem:[#allocation4_spill] sm:$0xff] }
 0x150   : > { %v2455_v46 = vpop.eup %2454  ;;  %2464 = vtanh.f32 %v1272_v17  ;;  %v1231_v57 = vadd.f32 %v2291_v53, %v1134_v19  ;;  %v2219_v44 = vadd.f32 %v2218_v36, %v2217_v61  ;;  %v1235_v34 = vpop.f32.mrf.mxu1  ;;  %v2237_v61 = vadd.f32 %v3285_v29, %v3284_v58 }
 0x151   : > { %2466 = vtanh.f32 %v1271_v43  ;;  %v2220_v4 = vpop.f32.mrf.mxu0  ;;  %v1300_v10 = vmul.f32 0.5, %v2455_v46  ;;  %v1066_v19 = vadd.f32 %v2173_v8, %v969_v26  ;;  %v1166_v43 = vadd.f32 %v2240_v22, %v1069_v51 }
 0x152   : > { %v1273_v39 = vmul.f32 0.5, %v1231_v57  ;;  %v1139_v25 = vadd.f32 %v2219_v44, %v2983_v42  ;;  %v3086_v3 = vpop.f32.mrf.mxu1  ;;  %v2457_v6 = vpop.eup %2456  ;;  %v1158_v46 = vadd.f32 %v2234_v5, %v1061_v38 }
 0x153   : > { %v2221_v14 = vpop.f32.mrf.mxu0  ;;  %v1298_v7 = vmul.f32 0.5, %v2457_v6  ;;  %v1316_v24 = vadd.f32 0.5, %v1300_v10  ;;  %v1163_v1 = vadd.f32 %v2237_v61, %v1066_v19  ;;  %v2450_v19 = vld [vmem:[%s3278_s5 + $0x18] sm:$0xff]  }
 0x154   : > { %v2459_v16 = vpop.eup %2458  ;;  %2468 = vtanh.f32 %v1273_v39  ;;  %v1236_v23 = vadd.f32 %v1235_v34, %v1139_v25  ;;  %v2222_v45 = vadd.f32 %v2221_v14, %v2220_v4  ;;  %v1238_v42 = vpop.f32.mrf.mxu1 }
 0x155   : > { %v1301_v49 = vmul.f32 0.5, %v2459_v16  ;;  %v2223_v50 = vpop.f32.mrf.mxu0  ;;  %v1314_v60 = vadd.f32 0.5, %v1298_v7 }
 0x156   : > { %v2461_v2 = vpop.eup %2460  ;;  %v1274_v27 = vmul.f32 0.5, %v1236_v23  ;;  %v1142_v30 = vadd.f32 %v2222_v45, %v1045_v56  ;;  %v2298_v53 = vpop.f32.mrf.mxu1 }
 0x157   : > { %v1317_v13 = vadd.f32 0.5, %v1301_v49  ;;  %v1299_v35 = vmul.f32 0.5, %v2461_v2  ;;  %v2224_v12 = vpop.f32.mrf.mxu0  ;;  %v1260_v8 = vadd.f32 %v2298_v53, %v1163_v1 }
 0x158   : > { %2470 = vtanh.f32 %v1274_v27  ;;  %v1239_v9 = vadd.f32 %v1238_v42, %v1142_v30  ;;  %v2225_v11 = vadd.f32 %v2224_v12, %v2223_v50  ;;  %v1251_v41 = vpop.f32.mrf.mxu1 }
 0x159   : > { %v1348_v55 = vpack.c.bf16 %v1317_v13, %v1316_v24  ;;  %v1315_v15 = vadd.f32 0.5, %v1299_v35  ;;  %v1252_v18 = vadd.f32 %v1251_v41, %v1155_v0  ;;  %v2226_v20 = vpop.f32.mrf.mxu0  ;;  %v1280_v48 = vmul.f32 0.5, %v1260_v8 }
 0x15a   : > { %v2463_v32 = vpop.eup %2462  ;;  %v1275_v33 = vmul.f32 0.5, %v1239_v9  ;;  %v1147_v21 = vadd.f32 %v2225_v11, %v3286_v37  ;;  %v2299_v17 = vpop.f32.mrf.mxu1  ;;  %v2447_v37 = vld [vmem:[%s3278_s5 + $0x30] sm:$0xff]  }
 0x15b   : > { %v1278_v40 = vmul.f32 0.5, %v1252_v18  ;;  %v2227_v36 = vpop.f32.mrf.mxu0  ;;  %v1347_v34 = vpack.c.bf16 %v1315_v15, %v1314_v60  ;;  %v1302_v59 = vmul.f32 0.5, %v2463_v32  ;;  %v1263_v25 = vadd.f32 %v2299_v17, %v1166_v43  ;;  %2334 = vmatprep.subr.bf16.mxu0 %v2447_v37  ;;  %v2449_v17 = vld [vmem:[%s3278_s5 + $0x20] sm:$0xff]   ;;  %v2452_v43 = vld [vmem:[%s3278_s5 + $0x8] sm:$0xff]  }
 0x15c   : > { %2472 = vtanh.f32 %v1275_v33  ;;  %v1244_v54 = vadd.f32 %v3073_v31, %v1147_v21  ;;  %v2228_v57 = vadd.f32 %v2227_v36, %v2226_v20  ;;  %v1254_v44 = vpop.f32.mrf.mxu1  ;;  %2335 = vmatpush3.bf16.msra.mxu0 %v2447_v37  ;;  %v2448_v21 = vld [vmem:[%s3278_s5 + $0x28] sm:$0xff]   ;;  %v2453_v36 = vld [vmem:[%s3278_s5] sm:$0xff]  }
 0x15d   : > { %v2465_v56 = vpop.eup %2464  ;;  %v1255_v62 = vadd.f32 %v1254_v44, %v1158_v46  ;;  %2316 = vmatprep.mubr.bf16.mxu1 %v1347_v34  ;;  %2474 = vtanh.f32 %v1278_v40  ;;  %v1318_v16 = vadd.f32 0.5, %v1302_v59  ;;  %v1281_v23 = vmul.f32 0.5, %v1263_v25  ;;  %2336 = vmatprep.subr.bf16.mxu0 %v2448_v21  ;;  %v2451_v40 = vld [vmem:[%s3278_s5 + $0x10] sm:$0xff]   ;;  %v3131_v46 = vld [vmem:[%s3277_s4] ss:$0 sm:$0xff] }
 0x15e   : > { %v2467_v4 = vpop.eup %2466  ;;  %v1276_v39 = vmul.f32 0.5, %v1244_v54  ;;  %v1150_v6 = vadd.f32 %v2228_v57, %v3083_v63  ;;  %2317 = vmatmul.mubr.bf16.vlgmr.msra.gmra.mxu1 %v1348_v55  ;;  %v1304_v10 = vmul.f32 0.5, %v2465_v56 }
 0x15f   : > { %v1303_v28 = vmul.f32 0.5, %v2467_v4  ;;  %v1279_v52 = vmul.f32 0.5, %v1255_v62 }
 0x160   : > { %2476 = vtanh.f32 %v1276_v39  ;;  %v1247_v31 = vadd.f32 %v3086_v3, %v1150_v6  ;;  %v1320_v63 = vadd.f32 0.5, %v1304_v10  ;;  %2337 = vmatpush3.bf16.msra.mxu0 %v2448_v21 }
 0x161   : > { %v2469_v14 = vpop.eup %2468  ;;  %v1319_v26 = vadd.f32 0.5, %v1303_v28  ;;  %2478 = vtanh.f32 %v1279_v52  ;;  %2338 = vmatprep.subr.bf16.mxu0 %v2449_v17 }
 0x162   : > { %v1277_v45 = vmul.f32 0.5, %v1247_v31  ;;  %v1305_v42 = vmul.f32 0.5, %v2469_v14 }
 0x163   : > { %v1349_v47 = vpack.c.bf16 %v1319_v26, %v1318_v16 }
 0x164   : > { %2480 = vtanh.f32 %v1277_v45  ;;  %v1321_v49 = vadd.f32 0.5, %v1305_v42  ;;  %2339 = vmatpush3.bf16.msra.mxu0 %v2449_v17 }
 0x165   : > { %v2471_v50 = vpop.eup %2470  ;;  %2320 = vmatprep.mubr.bf16.mxu1 %v1349_v47  ;;  %2482 = vtanh.f32 %v1281_v23  ;;  %2340 = vmatprep.subr.bf16.mxu0 %v2450_v19 }
 0x166   : > { %v1350_v0 = vpack.c.bf16 %v1321_v49, %v1320_v63  ;;  %v1306_v2 = vmul.f32 0.5, %v2471_v50  ;;  %2484 = vtanh.f32 %v1280_v48 }
 0x168   : > { %2321 = vmatmul.mubr.bf16.gmra.mxu1 %v1350_v0  ;;  %v1322_v27 = vadd.f32 0.5, %v1306_v2  ;;  %2341 = vmatpush3.bf16.msra.mxu0 %v2450_v19 }
 0x169   : > { %v2473_v3 = vpop.eup %2472  ;;  %2342 = vmatprep.subr.bf16.mxu0 %v2451_v40 }
 0x16a   : > { %v1307_v5 = vmul.f32 0.5, %v2473_v3  ;;  %v2475_v7 = vpop.eup %2474 }
 0x16b   : > { %v1310_v38 = vmul.f32 0.5, %v2475_v7 }
 0x16c   : > { %v1323_v30 = vadd.f32 0.5, %v1307_v5  ;;  %2343 = vmatpush3.bf16.msra.mxu0 %v2451_v40 }
 0x16d   : > { %v2477_v53 = vpop.eup %2476  ;;  %v1326_v18 = vadd.f32 0.5, %v1310_v38  ;;  %2344 = vmatprep.subr.bf16.mxu0 %v2452_v43 }
 0x16e   : > { %v2479_v22 = vpop.eup %2478  ;;  %v1351_v24 = vpack.c.bf16 %v1323_v30, %v1322_v27  ;;  %v1308_v35 = vmul.f32 0.5, %v2477_v53 }
 0x16f   : > { %v1311_v13 = vmul.f32 0.5, %v2479_v22 }
 0x170   : > { %2324 = vmatprep.mubr.bf16.mxu1 %v1351_v24  ;;  %v1324_v51 = vadd.f32 0.5, %v1308_v35  ;;  %2345 = vmatpush3.bf16.msra.mxu0 %v2452_v43 }
 0x171   : > { %v2481_v12 = vpop.eup %2480  ;;  %v1327_v41 = vadd.f32 0.5, %v1311_v13  ;;  %2346 = vmatprep.subr.bf16.mxu0 %v2453_v36 }
 0x172   : > { %v1309_v9 = vmul.f32 0.5, %v2481_v12  ;;  %v2483_v11 = vpop.eup %2482 }
 0x173   : > { %v2485_v15 = vpop.eup %2484  ;;  %v1313_v20 = vmul.f32 0.5, %v2483_v11  ;;  %v1353_v58 = vpack.c.bf16 %v1327_v41, %v1326_v18 }
 0x174   : > { %v1325_v55 = vadd.f32 0.5, %v1309_v9  ;;  %v1312_v29 = vmul.f32 0.5, %v2485_v15  ;;  %2347 = vmatpush3.bf16.msra.mxu0 %v2453_v36 }
 0x175   : > { %v1329_v61 = vadd.f32 0.5, %v1313_v20 }
 0x176   : > { %v1352_v32 = vpack.c.bf16 %v1325_v55, %v1324_v51  ;;  %v1328_v60 = vadd.f32 0.5, %v1312_v29 }
 0x178   : > { %2325 = vmatmul.mubr.bf16.gmra.mxu1 %v1352_v32  ;;  %v1354_v33 = vpack.c.bf16 %v1329_v61, %v1328_v60 }
 0x179   : > { %2328 = vmatprep.mubr.bf16.mxu1 %v1353_v58 }
 0x180   : > { %2329 = vmatmul.mubr.bf16.gmra.mxu1 %v1354_v33 }
 0x21e   : > { %v2318_v54 = vpop.f32.mrf.mxu1 }
 0x21f   : > { %v1452_v57 = vadd.f32 %v2318_v54, %v3131_v46 }
 0x220   : > { %v1443_v44 = vpop.f32.mrf.mxu1 }
 0x221   : > { %v1444_v34 = vadd.f32 %v3131_v46, %v1443_v44  ;;  %v1508_v56 = vmul.f32 0.5, %v1452_v57 }
 0x222   : > { %v2319_v59 = vpop.f32.mrf.mxu1 }
 0x223   : > { %v1506_v62 = vmul.f32 0.5, %v1444_v34  ;;  %v1455_v4 = vadd.f32 %v2319_v59, %v3131_v46 }
 0x224   : > { %v1446_v1 = vpop.f32.mrf.mxu1 }
 0x225   : > { %2486 = vtanh.f32 %v1506_v62  ;;  %v1509_v39 = vmul.f32 0.5, %v1455_v4  ;;  %v1447_v25 = vadd.f32 %v3131_v46, %v1446_v1 }
 0x226   : > { %2488 = vtanh.f32 %v1508_v56 }
 0x227   : > { %2490 = vtanh.f32 %v1509_v39  ;;  %v1507_v6 = vmul.f32 0.5, %v1447_v25 }
 0x228   : > { %v2322_v28 = vpop.f32.mrf.mxu1 }
 0x229   : > { %v1468_v52 = vadd.f32 %v2322_v28, %v3131_v46  ;;  %2492 = vtanh.f32 %v1507_v6 }
 0x22a   : > { %v1459_v8 = vpop.f32.mrf.mxu1 }
 0x22b   : > { %v1460_v31 = vadd.f32 %v3131_v46, %v1459_v8  ;;  %v1512_v10 = vmul.f32 0.5, %v1468_v52 }
 0x22c   : > { %v2323_v14 = vpop.f32.mrf.mxu1 }
 0x22d   : > { %v1510_v16 = vmul.f32 0.5, %v1460_v31  ;;  %v1471_v26 = vadd.f32 %v2323_v14, %v3131_v46 }
 0x22e   : > { %v1462_v23 = vpop.f32.mrf.mxu1 }
 0x22f   : > { %2494 = vtanh.f32 %v1510_v16  ;;  %v1513_v45 = vmul.f32 0.5, %v1471_v26  ;;  %v1463_v42 = vadd.f32 %v3131_v46, %v1462_v23 }
 0x230   : > { %2496 = vtanh.f32 %v1512_v10 }
 0x231   : > { %2498 = vtanh.f32 %v1513_v45  ;;  %v1511_v47 = vmul.f32 0.5, %v1463_v42 }
 0x232   : > { %v2487_v48 = vpop.eup %2486 }
 0x233   : > { %2500 = vtanh.f32 %v1511_v47  ;;  %v2489_v63 = vpop.eup %2488  ;;  %v1538_v50 = vmul.f32 0.5, %v2487_v48 }
 0x234   : > { %v2491_v49 = vpop.eup %2490  ;;  %v1540_v3 = vmul.f32 0.5, %v2489_v63 }
 0x235   : > { %v1541_v0 = vmul.f32 0.5, %v2491_v49  ;;  %v1554_v53 = vadd.f32 0.5, %v1538_v50 }
 0x236   : > { %v2493_v2 = vpop.eup %2492  ;;  %v1556_v13 = vadd.f32 0.5, %v1540_v3 }
 0x237   : > { %v1539_v5 = vmul.f32 0.5, %v2493_v2  ;;  %v1557_v27 = vadd.f32 0.5, %v1541_v0 }
 0x238   : > { %v2326_v7 = vpop.f32.mrf.mxu1 }
 0x239   : > { %v1484_v30 = vadd.f32 %v2326_v7, %v3131_v46  ;;  %v1555_v22 = vadd.f32 0.5, %v1539_v5  ;;  %v1588_v51 = vpack.c.bf16 %v1557_v27, %v1556_v13 }
 0x23a   : > { %v1475_v24 = vpop.f32.mrf.mxu1 }
 0x23b   : > { %v1476_v35 = vadd.f32 %v3131_v46, %v1475_v24  ;;  %v1516_v38 = vmul.f32 0.5, %v1484_v30  ;;  %v1587_v11 = vpack.c.bf16 %v1555_v22, %v1554_v53 }
 0x23c   : > { %v2495_v12 = vpop.eup %2494  ;;  %v2327_v9 = vpop.f32.mrf.mxu1 }
 0x23d   : > { %v2497_v41 = vpop.eup %2496  ;;  %v1514_v55 = vmul.f32 0.5, %v1476_v35  ;;  %v1487_v18 = vadd.f32 %v2327_v9, %v3131_v46  ;;  %2348 = vmatprep.mubr.bf16.mxu0 %v1587_v11  ;;  %v1542_v32 = vmul.f32 0.5, %v2495_v12  ;;  %v2038_v12 = vld [vmem:[%s3279_s6] ss:$0 sm:$0xff] }
 0x23e   : > { %v2499_v15 = vpop.eup %2498  ;;  %v1478_v20 = vpop.f32.mrf.mxu1  ;;  %2349 = vmatmul.mubr.bf16.vlgmr.msra.gmra.mxu0 %v1588_v51  ;;  %v1544_v60 = vmul.f32 0.5, %v2497_v41 }
 0x23f   : > { %v1545_v58 = vmul.f32 0.5, %v2499_v15  ;;  %2502 = vtanh.f32 %v1514_v55  ;;  %v1479_v29 = vadd.f32 %v3131_v46, %v1478_v20  ;;  %v1517_v33 = vmul.f32 0.5, %v1487_v18 }
 0x240   : > { %v2501_v61 = vpop.eup %2500  ;;  %2504 = vtanh.f32 %v1516_v38  ;;  %v2330_v37 = vpop.f32.mrf.mxu1  ;;  %v1558_v36 = vadd.f32 0.5, %v1542_v32  ;;  %v1560_v44 = vadd.f32 0.5, %v1544_v60 }
 0x241   : > { %v1543_v21 = vmul.f32 0.5, %v2501_v61  ;;  %v1515_v17 = vmul.f32 0.5, %v1479_v29  ;;  %v1500_v19 = vadd.f32 %v2330_v37, %v3131_v46  ;;  %v1561_v40 = vadd.f32 0.5, %v1545_v58 }
 0x242   : > { %2506 = vtanh.f32 %v1517_v33  ;;  %v1491_v43 = vpop.f32.mrf.mxu1 }
 0x243   : > { %v1559_v54 = vadd.f32 0.5, %v1543_v21  ;;  %2508 = vtanh.f32 %v1515_v17  ;;  %v1492_v57 = vadd.f32 %v3131_v46, %v1491_v43  ;;  %v1520_v34 = vmul.f32 0.5, %v1500_v19 }
 0x244   : > { %v2331_v56 = vpop.f32.mrf.mxu1  ;;  %v1590_v39 = vpack.c.bf16 %v1561_v40, %v1560_v44 }
 0x245   : > { %v1518_v59 = vmul.f32 0.5, %v1492_v57  ;;  %v1503_v62 = vadd.f32 %v2331_v56, %v3131_v46  ;;  %v1589_v4 = vpack.c.bf16 %v1559_v54, %v1558_v36 }
 0x246   : > { %v1494_v1 = vpop.f32.mrf.mxu1 }
 0x247   : > { %2510 = vtanh.f32 %v1518_v59  ;;  %v1521_v25 = vmul.f32 0.5, %v1503_v62  ;;  %v1495_v6 = vadd.f32 %v3131_v46, %v1494_v1  ;;  %2352 = vmatprep.mubr.bf16.mxu0 %v1589_v4 }
 0x248   : > { %2512 = vtanh.f32 %v1520_v34  ;;  %2353 = vmatmul.mubr.bf16.gmra.mxu0 %v1590_v39 }
 0x249   : > { %2514 = vtanh.f32 %v1521_v25  ;;  %v1519_v28 = vmul.f32 0.5, %v1495_v6 }
 0x24b   : > { %2516 = vtanh.f32 %v1519_v28 }
 0x24c   : > { %v2503_v52 = vpop.eup %2502 }
 0x24d   : > { %v2505_v8 = vpop.eup %2504  ;;  %v1546_v10 = vmul.f32 0.5, %v2503_v52 }
 0x24e   : > { %v1548_v16 = vmul.f32 0.5, %v2505_v8 }
 0x24f   : > { %v2507_v31 = vpop.eup %2506  ;;  %v1562_v42 = vadd.f32 0.5, %v1546_v10 }
 0x250   : > { %v2509_v14 = vpop.eup %2508  ;;  %v1549_v26 = vmul.f32 0.5, %v2507_v31  ;;  %v1564_v63 = vadd.f32 0.5, %v1548_v16 }
 0x251   : > { %v1547_v23 = vmul.f32 0.5, %v2509_v14 }
 0x252   : > { %v1565_v45 = vadd.f32 0.5, %v1549_v26 }
 0x253   : > { %v1563_v47 = vadd.f32 0.5, %v1547_v23 }
 0x254   : > { %v2511_v48 = vpop.eup %2510  ;;  %v1592_v0 = vpack.c.bf16 %v1565_v45, %v1564_v63 }
 0x255   : > { %v2513_v46 = vpop.eup %2512  ;;  %v1591_v49 = vpack.c.bf16 %v1563_v47, %v1562_v42  ;;  %v1550_v2 = vmul.f32 0.5, %v2511_v48 }
 0x256   : > { %v2515_v50 = vpop.eup %2514  ;;  %v1552_v7 = vmul.f32 0.5, %v2513_v46 }
 0x257   : > { %v1553_v3 = vmul.f32 0.5, %v2515_v50  ;;  %2356 = vmatprep.mubr.bf16.mxu0 %v1591_v49  ;;  %v1566_v53 = vadd.f32 0.5, %v1550_v2 }
 0x258   : > { %v2517_v5 = vpop.eup %2516  ;;  %2357 = vmatmul.mubr.bf16.gmra.mxu0 %v1592_v0  ;;  %v1568_v24 = vadd.f32 0.5, %v1552_v7 }
 0x259   : > { %v1551_v27 = vmul.f32 0.5, %v2517_v5  ;;  %v1569_v30 = vadd.f32 0.5, %v1553_v3 }
 0x25b   : > { %v1567_v22 = vadd.f32 0.5, %v1551_v27  ;;  %v1594_v35 = vpack.c.bf16 %v1569_v30, %v1568_v24 }
 0x25d   : > { %v1593_v13 = vpack.c.bf16 %v1567_v22, %v1566_v53 }
 0x25f   : > { %2360 = vmatprep.mubr.bf16.mxu0 %v1593_v13 }
 0x260   : > { %2361 = vmatmul.mubr.bf16.gmra.mxu0 %v1594_v35 }
 0x2fe   : > { %v2350_v38 = vpop.f32.mrf.mxu0 }
 0x2ff   : > { %v1692_v9 = vadd.f32 %v2350_v38, %v2038_v12 }
 0x300   : > { %v1683_v11 = vpop.f32.mrf.mxu0 }
 0x301   : > { %v1684_v41 = vadd.f32 %v2038_v12, %v1683_v11  ;;  %1750 = vmax.xlane.f32.xlu1 %v1692_v9 }
 0x302   : > { %v2351_v51 = vpop.f32.mrf.mxu0 }
 0x303   : > { %v1695_v55 = vadd.f32 %v2351_v51, %v2038_v12  ;;  %1746 = vmax.xlane.f32.xlu0 %v1684_v41 }
 0x304   : > { %v1686_v15 = vpop.f32.mrf.mxu0 }
 0x305   : > { %v1687_v18 = vadd.f32 %v2038_v12, %v1686_v15  ;;  %1752 = vmax.xlane.f32.xlu1 %v1695_v55 }
 0x307   : > { %1748 = vmax.xlane.f32.xlu0 %v1687_v18 }
 0x308   : > { %v2354_v20 = vpop.f32.mrf.mxu0 }
 0x309   : > { %v1708_v32 = vadd.f32 %v2354_v20, %v2038_v12 }
 0x30a   : > { %v1699_v58 = vpop.f32.mrf.mxu0 }
 0x30b   : > { %1758 = vmax.xlane.f32.xlu0 %v1708_v32  ;;  %v1700_v60 = vadd.f32 %v2038_v12, %v1699_v58 }
 0x30c   : > { %v2355_v29 = vpop.f32.mrf.mxu0 }
 0x30d   : > { %v1711_v61 = vadd.f32 %v2355_v29, %v2038_v12 }
 0x30e   : > { %v1702_v33 = vpop.f32.mrf.mxu0 }
 0x30f   : > { %1760 = vmax.xlane.f32.xlu1 %v1711_v61  ;;  %1754 = vmax.xlane.f32.xlu0 %v1700_v60  ;;  %v1703_v37 = vadd.f32 %v2038_v12, %v1702_v33 }
 0x313   : > { %1756 = vmax.xlane.f32.xlu1 %v1703_v37 }
 0x318   : > { %v2358_v21 = vpop.f32.mrf.mxu0 }
 0x319   : > { %v3152_v17 = vadd.f32 %v2358_v21, %v2038_v12 }
 0x31a   : > { %v1715_v19 = vpop.f32.mrf.mxu0 }
 0x31b   : > { %1766 = vmax.xlane.f32.xlu0 %v3152_v17  ;;  %v3155_v43 = vadd.f32 %v2038_v12, %v1715_v19 }
 0x31c   : > { %v2359_v40 = vpop.f32.mrf.mxu0 }
 0x31d   : > { %v3157_v36 = vadd.f32 %v2359_v40, %v2038_v12 }
 0x31e   : > { %v1718_v54 = vpop.f32.mrf.mxu0 }
 0x31f   : > { %1768 = vmax.xlane.f32.xlu1 %v3157_v36  ;;  %1762 = vmax.xlane.f32.xlu0 %v3155_v43  ;;  %v3161_v44 = vadd.f32 %v2038_v12, %v1718_v54 }
 0x320   : > { %v2362_v57 = vpop.f32.mrf.mxu0 }
 0x321   : > { %v3167_v4 = vadd.f32 %v2362_v57, %v2038_v12 }
 0x322   : > { %v1731_v34 = vpop.f32.mrf.mxu0 }
 0x323   : > { %v3163_v56 = vadd.f32 %v2038_v12, %v1731_v34  ;;  %1764 = vmax.xlane.f32.xlu1 %v3161_v44 }
 0x324   : > { %v2363_v59 = vpop.f32.mrf.mxu0 }
 0x325   : > { %1770 = vmax.xlane.f32.xlu0 %v3163_v56  ;;  %v3173_v39 = vadd.f32 %v2363_v59, %v2038_v12 }
 0x326   : > { %v1734_v62 = vpop.f32.mrf.mxu0 }
 0x327   : > { %v3169_v1 = vadd.f32 %v2038_v12, %v1734_v62 }
 0x329   : > { %1772 = vmax.xlane.f32.xlu1 %v3169_v1  ;;  %1774 = vmax.xlane.f32.xlu0 %v3167_v4 }
 0x32d   : > { %1776 = vmax.xlane.f32.xlu1 %v3173_v39 }
 0x38a   : > { %v1751_v25 = vpop.xlane.xlu1 %1750 }
 0x38b   : > { %v1780_v6 = vsub.f32 %v1692_v9, %v1751_v25 }
 0x38c   : > { %v1747_v28 = vpop.xlane.xlu0 %1746 }
 0x38d   : > { %v1798_v52 = vmul.f32 1.442695, %v1780_v6  ;;  %v1778_v8 = vsub.f32 %v1684_v41, %v1747_v28 }
 0x38e   : > { %v1753_v31 = vpop.xlane.xlu1 %1752 }
 0x38f   : > { %2518 = vpow2.f32 %v1798_v52  ;;  %v1794_v10 = vmul.f32 1.442695, %v1778_v8  ;;  %v1781_v14 = vsub.f32 %v1695_v55, %v1753_v31 }
 0x390   : > { %v1749_v16 = vpop.xlane.xlu0 %1748 }
 0x391   : > { %v1800_v26 = vmul.f32 1.442695, %v1781_v14  ;;  %v1779_v23 = vsub.f32 %v1687_v18, %v1749_v16  ;;  %2520 = vpow2.f32 %v1794_v10 }
 0x393   : > { %2522 = vpow2.f32 %v1800_v26  ;;  %v1796_v45 = vmul.f32 1.442695, %v1779_v23 }
 0x394   : > { %v1759_v42 = vpop.xlane.xlu0 %1758 }
 0x395   : > { %v1784_v47 = vsub.f32 %v1708_v32, %v1759_v42  ;;  %2524 = vpow2.f32 %v1796_v45 }
 0x397   : > { %v1806_v48 = vmul.f32 1.442695, %v1784_v47 }
 0x398   : > { %v1761_v63 = vpop.xlane.xlu1 %1760  ;;  %v1755_v49 = vpop.xlane.xlu0 %1754 }
 0x399   : > { %v1785_v46 = vsub.f32 %v1711_v61, %v1761_v63  ;;  %2526 = vpow2.f32 %v1806_v48  ;;  %v1782_v50 = vsub.f32 %v1700_v60, %v1755_v49 }
 0x39b   : > { %v1808_v0 = vmul.f32 1.442695, %v1785_v46  ;;  %v1802_v2 = vmul.f32 1.442695, %v1782_v50 }
 0x39c   : > { %v1757_v3 = vpop.xlane.xlu1 %1756  ;;  %v3176_v5 = vpop.eup %2518 }
 0x39d   : > { %2528 = vpow2.f32 %v1808_v0  ;;  %v1783_v7 = vsub.f32 %v1703_v37, %v1757_v3  ;;  %1830 = vadd.xlane.f32.xlu0 %v3176_v5 }
 0x39e   : > { %2530 = vpow2.f32 %v1802_v2  ;;  %v3179_v30 = vpop.eup %2520 }
 0x39f   : > { %v1804_v27 = vmul.f32 1.442695, %v1783_v7 }
 0x3a0   : > { %v3181_v53 = vpop.eup %2522 }
 0x3a1   : > { %2532 = vpow2.f32 %v1804_v27  ;;  %1832 = vadd.xlane.f32.xlu1 %v3181_v53  ;;  %1826 = vadd.xlane.f32.xlu0 %v3179_v30 }
 0x3a2   : > { %v3185_v24 = vpop.eup %2524 }
 0x3a4   : > { %v1767_v22 = vpop.xlane.xlu0 %1766 }
 0x3a5   : > { %v1788_v13 = vsub.f32 %v3152_v17, %v1767_v22  ;;  %1828 = vadd.xlane.f32.xlu1 %v3185_v24 }
 0x3a6   : > { %v3189_v35 = vpop.eup %2526 }
 0x3a7   : > { %v1814_v12 = vmul.f32 1.442695, %v1788_v13  ;;  %1838 = vadd.xlane.f32.xlu0 %v3189_v35 }
 0x3a8   : > { %v1769_v38 = vpop.xlane.xlu1 %1768  ;;  %v1763_v9 = vpop.xlane.xlu0 %1762 }
 0x3a9   : > { %2534 = vpow2.f32 %v1814_v12  ;;  %v1789_v11 = vsub.f32 %v3157_v36, %v1769_v38  ;;  %v1786_v41 = vsub.f32 %v3155_v43, %v1763_v9 }
 0x3aa   : > { %v3194_v51 = vpop.eup %2528 }
 0x3ab   : > { %v3196_v55 = vpop.eup %2530  ;;  %v1816_v15 = vmul.f32 1.442695, %v1789_v11  ;;  %v1810_v18 = vmul.f32 1.442695, %v1786_v41  ;;  %1840 = vadd.xlane.f32.xlu1 %v3194_v51 }
 0x3ac   : > { %1834 = vadd.xlane.f32.xlu0 %v3196_v55  ;;  %v1765_v20 = vpop.xlane.xlu1 %1764 }
 0x3ad   : > { %2536 = vpow2.f32 %v1816_v15  ;;  %v1787_v32 = vsub.f32 %v3161_v44, %v1765_v20 }
 0x3ae   : > { %v3201_v58 = vpop.eup %2532  ;;  %2538 = vpow2.f32 %v1810_v18  ;;  %v1771_v29 = vpop.xlane.xlu0 %1770 }
 0x3af   : > { %v1812_v61 = vmul.f32 1.442695, %v1787_v32  ;;  %v1790_v60 = vsub.f32 %v3163_v56, %v1771_v29  ;;  %1836 = vadd.xlane.f32.xlu1 %v3201_v58 }
 0x3b1   : > { %2540 = vpow2.f32 %v1812_v61  ;;  %v1818_v33 = vmul.f32 1.442695, %v1790_v60 }
 0x3b2   : > { %v1773_v37 = vpop.xlane.xlu1 %1772  ;;  %v1775_v21 = vpop.xlane.xlu0 %1774 }
 0x3b3   : > { %2542 = vpow2.f32 %v1818_v33  ;;  %v1791_v17 = vsub.f32 %v3169_v1, %v1773_v37  ;;  %v1792_v19 = vsub.f32 %v3167_v4, %v1775_v21 }
 0x3b5   : > { %v1820_v40 = vmul.f32 1.442695, %v1791_v17  ;;  %v1822_v43 = vmul.f32 1.442695, %v1792_v19 }
 0x3b6   : > { %v3207_v36 = vpop.eup %2534  ;;  %v1777_v54 = vpop.xlane.xlu1 %1776 }
 0x3b7   : > { %2544 = vpow2.f32 %v1820_v40  ;;  %v1793_v57 = vsub.f32 %v3173_v39, %v1777_v54  ;;  %1846 = vadd.xlane.f32.xlu0 %v3207_v36 }
 0x3b8   : > { %2546 = vpow2.f32 %v1822_v43 }
 0x3b9   : > { %v1824_v44 = vmul.f32 1.442695, %v1793_v57 }
 0x3ba   : > { %v3211_v34 = vpop.eup %2536 }
 0x3bb   : > { %v3213_v56 = vpop.eup %2538  ;;  %2548 = vpow2.f32 %v1824_v44  ;;  %1848 = vadd.xlane.f32.xlu1 %v3211_v34 }
 0x3bc   : > { %1842 = vadd.xlane.f32.xlu0 %v3213_v56 }
 0x3be   : > { %v3217_v59 = vpop.eup %2540 }
 0x3bf   : > { %1844 = vadd.xlane.f32.xlu1 %v3217_v59 }
 0x3c0   : > { %v3220_v62 = vpop.eup %2542 }
 0x3c1   : > { %1850 = vadd.xlane.f32.xlu0 %v3220_v62 }
 0x3c4   : > { %v3223_v4 = vpop.eup %2544 }
 0x3c5   : > { %v3225_v1 = vpop.eup %2546  ;;  %1852 = vadd.xlane.f32.xlu1 %v3223_v4 }
 0x3c6   : > { %1854 = vadd.xlane.f32.xlu0 %v3225_v1 }
 0x3c8   : > { %v3229_v39 = vpop.eup %2548 }
 0x3c9   : > { %1856 = vadd.xlane.f32.xlu1 %v3229_v39 }
 0x426   : > { %v1831_v25 = vpop.xlane.xlu0 %1830 }
 0x427   : > { %2550 = vrcp.f32 %v1831_v25 }
 0x42a   : > { %v1833_v6 = vpop.xlane.xlu1 %1832  ;;  %v1827_v28 = vpop.xlane.xlu0 %1826 }
 0x42b   : > { %2552 = vrcp.f32 %v1833_v6 }
 0x42c   : > { %2554 = vrcp.f32 %v1827_v28 }
 0x42e   : > { %v1829_v52 = vpop.xlane.xlu1 %1828 }
 0x42f   : > { %2556 = vrcp.f32 %v1829_v52 }
 0x430   : > { %v1839_v8 = vpop.xlane.xlu0 %1838 }
 0x431   : > { %2558 = vrcp.f32 %v1839_v8 }
 0x434   : > { %v1841_v31 = vpop.xlane.xlu1 %1840  ;;  %v2551_v10 = vpop.eup %2550 }
 0x435   : > { %2560 = vrcp.f32 %v1841_v31  ;;  %v1835_v14 = vpop.xlane.xlu0 %1834  ;;  %v1863_v16 = vmul.f32 %v2551_v10, %v3176_v5 }
 0x436   : > { %2562 = vrcp.f32 %v1835_v14 }
 0x437   : > { %1892 = vst [vmem:[%s3236_s21 + $0x10] sm:$0xff] %v1863_v16 }
 0x438   : > { %v1837_v26 = vpop.xlane.xlu1 %1836  ;;  %v2553_v23 = vpop.eup %2552 }
 0x439   : > { %2564 = vrcp.f32 %v1837_v26  ;;  %v2555_v45 = vpop.eup %2554  ;;  %v1865_v42 = vmul.f32 %v2553_v23, %v3181_v53 }
 0x43a   : > { %v1859_v47 = vmul.f32 %v2555_v45, %v3179_v30 }
 0x43b   : > { %1893 = vst [vmem:[%s3236_s21 + $0x18] sm:$0xff] %v1865_v42 }
 0x43c   : > { %v2557_v48 = vpop.eup %2556  ;;  %1890 = vst [vmem:[%s3236_s21] sm:$0xff] %v1859_v47 }
 0x43d   : > { %v1861_v63 = vmul.f32 %v2557_v48, %v3185_v24 }
 0x43e   : > { %v2559_v46 = vpop.eup %2558 }
 0x43f   : > { %1891 = vst [vmem:[%s3236_s21 + $0x8] sm:$0xff] %v1861_v63  ;;  %v1871_v49 = vmul.f32 %v2559_v46, %v3189_v35 }
 0x440   : > { %v1847_v50 = vpop.xlane.xlu0 %1846 }
 0x441   : > { %2566 = vrcp.f32 %v1847_v50  ;;  %1896 = vst [vmem:[%s3236_s21 + $0x30] sm:$0xff] %v1871_v49 }
 0x442   : > { %v2561_v0 = vpop.eup %2560 }
 0x443   : > { %v2563_v2 = vpop.eup %2562  ;;  %v1873_v3 = vmul.f32 %v2561_v0, %v3194_v51 }
 0x444   : > { %v1867_v5 = vmul.f32 %v2563_v2, %v3196_v55  ;;  %v1849_v7 = vpop.xlane.xlu1 %1848 }
 0x445   : > { %1897 = vst [vmem:[%s3236_s21 + $0x38] sm:$0xff] %v1873_v3  ;;  %2568 = vrcp.f32 %v1849_v7  ;;  %v1843_v27 = vpop.xlane.xlu0 %1842 }
 0x446   : > { %v2565_v30 = vpop.eup %2564  ;;  %1894 = vst [vmem:[%s3236_s21 + $0x20] sm:$0xff] %v1867_v5  ;;  %2570 = vrcp.f32 %v1843_v27 }
 0x447   : > { %v1869_v53 = vmul.f32 %v2565_v30, %v3201_v58 }
 0x448   : > { %v1845_v22 = vpop.xlane.xlu1 %1844 }
 0x449   : > { %1895 = vst [vmem:[%s3236_s21 + $0x28] sm:$0xff] %v1869_v53  ;;  %2572 = vrcp.f32 %v1845_v22 }
 0x44a   : > { %v1851_v24 = vpop.xlane.xlu0 %1850 }
 0x44b   : > { %2574 = vrcp.f32 %v1851_v24 }
 0x44e   : > { %v2567_v13 = vpop.eup %2566  ;;  %v1853_v35 = vpop.xlane.xlu1 %1852 }
 0x44f   : > { %v1879_v12 = vmul.f32 %v2567_v13, %v3207_v36  ;;  %2576 = vrcp.f32 %v1853_v35  ;;  %v1855_v38 = vpop.xlane.xlu0 %1854 }
 0x450   : > { %2578 = vrcp.f32 %v1855_v38 }
 0x451   : > { %1900 = vst [vmem:[%s3236_s21 + $0x50] sm:$0xff] %v1879_v12 }
 0x452   : > { %v2569_v9 = vpop.eup %2568  ;;  %v1857_v11 = vpop.xlane.xlu1 %1856 }
 0x453   : > { %v2571_v41 = vpop.eup %2570  ;;  %v1881_v51 = vmul.f32 %v2569_v9, %v3211_v34  ;;  %2580 = vrcp.f32 %v1857_v11 }
 0x454   : > { %v1875_v55 = vmul.f32 %v2571_v41, %v3213_v56 }
 0x455   : > { %1901 = vst [vmem:[%s3236_s21 + $0x58] sm:$0xff] %v1881_v51 }
 0x456   : > { %v2573_v15 = vpop.eup %2572  ;;  %1898 = vst [vmem:[%s3236_s21 + $0x40] sm:$0xff] %v1875_v55 }
 0x457   : > { %v1877_v18 = vmul.f32 %v2573_v15, %v3217_v59 }
 0x458   : > { %v2575_v20 = vpop.eup %2574 }
 0x459   : > { %1899 = vst [vmem:[%s3236_s21 + $0x48] sm:$0xff] %v1877_v18  ;;  %v1883_v32 = vmul.f32 %v2575_v20, %v3220_v62 }
 0x45b   : > { %1902 = vst [vmem:[%s3236_s21 + $0x60] sm:$0xff] %v1883_v32 }
 0x45c   : > { %v2577_v58 = vpop.eup %2576 }
 0x45d   : > { %v2579_v29 = vpop.eup %2578  ;;  %v1885_v61 = vmul.f32 %v2577_v58, %v3223_v4 }
 0x45e   : > { %v1887_v60 = vmul.f32 %v2579_v29, %v3225_v1 }
 0x45f   : > { %1903 = vst [vmem:[%s3236_s21 + $0x68] sm:$0xff] %v1885_v61 }
 0x460   : > { %v2581_v33 = vpop.eup %2580  ;;  %1904 = vst [vmem:[%s3236_s21 + $0x70] sm:$0xff] %v1887_v60 }
 0x461   : > { %v1889_v37 = vmul.f32 %v2581_v33, %v3229_v39 }
 0x463   : > { %1905 = vst [vmem:[%s3236_s21 + $0x78] sm:$0xff] %v1889_v37 }
 0x464 PF: > { %s17_s24 = sadd.s32 1, %s2588_s24  }
 0x465   : > { %p14_p4 = scmp.ge.s32.totalorder %s17_s24, 4  }
 0x467   :  { %16 = sbr.rel (!%p14_p4) target bundleno = 1 (0x1), region = 78 }

</bundles_post_ra>
